<compile_context>
chip_gen: v7x
topology: tpu7x:2x2x1
jax: 0.10.0
libtpu: 0.0.40
codegen_flags: <defaults>
</compile_context>

<pallas_src>
import functools
import math

import numpy as np
import jax
import jax.numpy as jnp
from jax import lax
from jax.experimental import pallas as pl
from jax.experimental.pallas import tpu as pltpu

EPS = 1e-5                   # nn.LayerNorm default
MXU_DTYPE = jnp.bfloat16     # MXU-native operand dtype; accumulation stays f32


# ----------------------------------------------------------------------------
# fused kernel: PE -> [norm1 -> MHA(+res, LN) -> FFN(+res, LN)] x num_layers -> final LN
# (one batch element per grid step)
# ----------------------------------------------------------------------------
def _fused_encoder_kernel(a_ref, b_ref, pea_ref, peb_ref,
                          wq_ref, wkv_ref, wfc_ref,
                          w1_ref, b1_ref, w2_ref, b2_ref,
                          n1g_ref, n1b_ref, lng_ref, lnb_ref,
                          l2g_ref, l2b_ref, fg_ref, fb_ref,
                          out_ref, *, num_layers, num_heads, embed_dim, embed_scale):
    D = embed_dim
    H = num_heads
    HD = H * D

    def layernorm(v, g, b):
        # one-pass statistics: var = E[x^2] - E[x]^2  (halves XLU reductions)
        mu = jnp.mean(v, axis=-1, keepdims=True)
        ex2 = jnp.mean(v * v, axis=-1, keepdims=True)
        var = jnp.maximum(ex2 - mu * mu, 0.0)
        return (v - mu) * lax.rsqrt(var + EPS) * g + b

    # embed scale + positional encoding for this batch element
    x = embed_scale * a_ref[0] + pea_ref[...]   # (Lq, D) f32
    y = embed_scale * b_ref[0] + peb_ref[...]   # (Lk, D) f32

    for l in range(num_layers):                 # static unroll; weights VMEM-resident
        xn = layernorm(x, n1g_ref[l], n1b_ref[l])     # shared norm1 for both streams
        yn = layernorm(y, n1g_ref[l], n1b_ref[l])
        xn_b = xn.astype(MXU_DTYPE)
        yn_b = yn.astype(MXU_DTYPE)

        # fused projections: Q (1/sqrt(D) folded into weights) and K|V slab.
        q = jnp.dot(xn_b, wq_ref[l], preferred_element_type=jnp.float32)    # (Lq, H*D)
        kv = jnp.dot(yn_b, wkv_ref[l], preferred_element_type=jnp.float32)  # (Lk, 2*H*D)
        q_b = q.astype(MXU_DTYPE)
        kv_b = kv.astype(MXU_DTYPE)

        ctx_heads = []
        for h in range(H):                      # tiny static unroll over heads; head
            qh = q_b[:, h * D:(h + 1) * D]      # slabs are static lane slices of the
            kh = kv_b[:, h * D:(h + 1) * D]     # fused projection outputs.
            vh = kv_b[:, HD + h * D:HD + (h + 1) * D]
            s = jnp.einsum('qd,kd->qk', qh, kh,
                           preferred_element_type=jnp.float32)              # (Lq, Lk)
            s = s - jnp.max(s, axis=-1, keepdims=True)
            p = jnp.exp(s)
            p = p * pl.reciprocal(jnp.sum(p, axis=-1, keepdims=True), approx=True)
            ctx_heads.append(jnp.dot(p.astype(MXU_DTYPE), vh,
                                     preferred_element_type=jnp.float32))   # (Lq, D)

        # heads lane-contiguous -> one output projection with H*D contraction depth
        ctx = jnp.concatenate(ctx_heads, axis=-1).astype(MXU_DTYPE)         # (Lq, H*D)
        attn_out = jnp.dot(ctx, wfc_ref[l], preferred_element_type=jnp.float32)

        h1 = layernorm(xn + attn_out, lng_ref[l], lnb_ref[l])   # residual = normed query
        hid = jnp.maximum(
            jnp.dot(h1.astype(MXU_DTYPE), w1_ref[l],
                    preferred_element_type=jnp.float32) + b1_ref[l], 0.0)
        ffn = jnp.dot(hid.astype(MXU_DTYPE), w2_ref[l],
                      preferred_element_type=jnp.float32) + b2_ref[l] + h1
        x = layernorm(ffn, l2g_ref[l], l2b_ref[l])

    out_ref[0] = layernorm(x, fg_ref[...], fb_ref[...])


# ----------------------------------------------------------------------------
# wrapper: pack / fuse / bf16-cast params once, call the fused kernel with a batch grid
# ----------------------------------------------------------------------------
_PARAM_KEYS = ("wq", "wkv", "wfc", "w1", "b1", "w2", "b2",
               "n1_g", "n1_b", "mha_ln_g", "mha_ln_b", "ffn_ln_g", "ffn_ln_b",
               "final_g", "final_b")


def _pack_params(layers, final_g, final_b, num_heads):
    """Stack per-layer params, fuse K|V, fold 1/sqrt(D) into Q, cast MXU weights to bf16."""
    D = layers[0]["wq"].shape[0]
    assert layers[0]["wq"].shape[1] == num_heads * D
    scaling = float(D) ** (-0.5)

    def stack(key, dtype=None):
        out = jnp.stack([lp[key] for lp in layers])
        return out.astype(dtype) if dtype is not None else out

    packed = {
        # 1/sqrt(D) folded into the Q weights BEFORE the bf16 cast
        "wq":  jnp.stack([lp["wq"] * scaling for lp in layers]).astype(MXU_DTYPE),  # (nl, D, H*D)
        # fused K|V projection: columns [0:H*D] = K heads, [H*D:2*H*D] = V heads
        "wkv": jnp.stack([jnp.concatenate([lp["wk"], lp["wv"]], axis=1)
                          for lp in layers]).astype(MXU_DTYPE),                     # (nl, D, 2*H*D)
        "wfc": stack("wfc", MXU_DTYPE),      # (nl, H*D, D): single H*D contraction
        "w1":  stack("w1", MXU_DTYPE),       # (nl, D, 4D)
        "b1":  stack("b1"),                  # (nl, 1, 4D) f32
        "w2":  stack("w2", MXU_DTYPE),       # (nl, 4D, D)
        "b2":  stack("b2"),                  # (nl, 1, D) f32
        "n1_g": stack("n1_g"), "n1_b": stack("n1_b"),
        "mha_ln_g": stack("mha_ln_g"), "mha_ln_b": stack("mha_ln_b"),
        "ffn_ln_g": stack("ffn_ln_g"), "ffn_ln_b": stack("ffn_ln_b"),
        "final_g": final_g, "final_b": final_b,
    }
    return [packed[k] for k in _PARAM_KEYS]


def transformer_encoder(alpha, beta, layers, final_g, final_b, *, num_heads, pe):
    # alpha, beta: (L, B, D) seq-first (PyTorch convention); returns (L, B, D)
    L, B, D = alpha.shape
    Lb = beta.shape[0]
    H = num_heads
    nl = len(layers)
    embed_scale = math.sqrt(D)

    params = _pack_params(layers, final_g, final_b, num_heads)
    pe_a = pe[:L, :D]     # (L, D)
    pe_b = pe[:Lb, :D]    # (Lb, D)

    # one transpose into batch-first for the whole stack (instead of 2 per layer)
    a_bf = jnp.transpose(alpha, (1, 0, 2))   # (B, L, D)
    b_bf = jnp.transpose(beta, (1, 0, 2))    # (B, Lb, D)

    kernel = functools.partial(
        _fused_encoder_kernel, num_layers=nl, num_heads=H,
        embed_dim=D, embed_scale=embed_scale)

    # full-array blocks with constant index_maps -> weights / PE stay VMEM-resident
    # across grid steps; activations are tiled one batch element per grid step.
    def resident(shape):
        nd = len(shape)
        return pl.BlockSpec(shape, lambda b, _nd=nd: (0,) * _nd)

    in_specs = [
        pl.BlockSpec((1, L, D), lambda b: (b, 0, 0)),    # alpha (batch-first)
        pl.BlockSpec((1, Lb, D), lambda b: (b, 0, 0)),   # beta  (batch-first)
        resident((L, D)),                                # pe_a
        resident((Lb, D)),                               # pe_b
        resident((nl, D, H * D)),                        # wq (scaled, bf16)
        resident((nl, D, 2 * H * D)),                    # wkv (bf16)
        resident((nl, H * D, D)),                        # wfc (bf16)
        resident((nl, D, 4 * D)),                        # w1  (bf16)
        resident((nl, 1, 4 * D)),                        # b1
        resident((nl, 4 * D, D)),                        # w2  (bf16)
        resident((nl, 1, D)),                            # b2
        resident((nl, 1, D)), resident((nl, 1, D)),      # norm1 gamma/beta
        resident((nl, 1, D)), resident((nl, 1, D)),      # MHA LayerNorm gamma/beta
        resident((nl, 1, D)), resident((nl, 1, D)),      # FFN LayerNorm gamma/beta
        resident((1, D)), resident((1, D)),              # final LayerNorm gamma/beta
    ]
    out_spec = pl.BlockSpec((1, L, D), lambda b: (b, 0, 0))

    out_bf = pl.pallas_call(
        kernel,
        out_shape=jax.ShapeDtypeStruct((B, L, D), jnp.float32),
        grid_spec=pltpu.PrefetchScalarGridSpec(
            num_scalar_prefetch=0,
            grid=(B,),
            in_specs=in_specs,
            out_specs=out_spec),
        compiler_params=pltpu.CompilerParams(
            dimension_semantics=("parallel",),       # v7x megacore shards the batch
            # raise above v5e's 16 MiB default scoped limit; re-tune (<=~48-56 MiB on
            # v7x, ~96-100 MiB on v5e/v6e) when scaling beyond the toy config.
            vmem_limit_bytes=48 * 1024 * 1024),
    )(a_bf, b_bf, pe_a, pe_b, *params)

    return jnp.transpose(out_bf, (1, 0, 2))  # back to (L, B, D)


# ----------------------------------------------------------------------------
# parameter init & sinusoidal PE table (deterministic, synthetic)
# ----------------------------------------------------------------------------
def sinusoid_table(n_position=1000, d_hid=512):
    pos = np.arange(n_position, dtype=np.float64)[:, None]
    j = np.arange(d_hid)[None, :]
    angle = pos / np.power(10000.0, 2.0 * (j // 2) / d_hid)
    table = angle.copy()
    table[:, 0::2] = np.sin(angle[:, 0::2])
    table[:, 1::2] = np.cos(angle[:, 1::2])
    return jnp.asarray(table, dtype=jnp.float32)


def init_params(key, embed_dim, num_heads, num_layers):
    D, H = embed_dim, num_heads

    def nrm(k, shape, scale=0.05):
        return scale * jax.random.normal(k, shape, dtype=jnp.float32)

    layers = []
    for i in range(num_layers):
        ks = jax.random.split(jax.random.fold_in(key, i), 8)
        layers.append(dict(
            n1_g=jnp.ones((1, D), jnp.float32), n1_b=jnp.zeros((1, D), jnp.float32),
            wq=nrm(ks[0], (D, H * D)), wk=nrm(ks[1], (D, H * D)), wv=nrm(ks[2], (D, H * D)),
            wfc=nrm(ks[3], (H * D, D)),
            mha_ln_g=jnp.ones((1, D), jnp.float32), mha_ln_b=jnp.zeros((1, D), jnp.float32),
            w1=nrm(ks[4], (D, 4 * D)), b1=nrm(ks[5], (1, 4 * D)),
            w2=nrm(ks[6], (4 * D, D)), b2=nrm(ks[7], (1, D)),
            ffn_ln_g=jnp.ones((1, D), jnp.float32), ffn_ln_b=jnp.zeros((1, D), jnp.float32),
        ))
    final_g = jnp.ones((1, D), jnp.float32)
    final_b = jnp.zeros((1, D), jnp.float32)
    return layers, final_g, final_b


# ----------------------------------------------------------------------------
# pure-JAX f32 reference (exact module semantics) for validation
# ----------------------------------------------------------------------------
def _ref_ln(x, g, b):
    mu = x.mean(-1, keepdims=True)
    var = ((x - mu) ** 2).mean(-1, keepdims=True)
    return (x - mu) / jnp.sqrt(var + EPS) * g.reshape(-1) + b.reshape(-1)


def reference_encoder(alpha, beta, layers, fg, fb, *, num_heads, pe):
    L, B, D = alpha.shape
    Lb = beta.shape[0]
    H = num_heads
    scale = math.sqrt(D)
    a = scale * alpha + pe[:L, :D][:, None, :]
    bt = scale * beta + pe[:Lb, :D][:, None, :]
    for lp in layers:
        x = jnp.transpose(a, (1, 0, 2))
        y = jnp.transpose(bt, (1, 0, 2))
        xn = _ref_ln(x, lp["n1_g"], lp["n1_b"])
        yn = _ref_ln(y, lp["n1_g"], lp["n1_b"])
        q = (xn @ lp["wq"]).reshape(B, -1, H, D).transpose(0, 2, 1, 3)
        k = (yn @ lp["wk"]).reshape(B, -1, H, D).transpose(0, 2, 1, 3)
        v = (yn @ lp["wv"]).reshape(B, -1, H, D).transpose(0, 2, 1, 3)
        s = jnp.einsum("bhqd,bhkd->bhqk", q, k) * D ** (-0.5)
        p = jax.nn.softmax(s, axis=-1)
        ctx = jnp.einsum("bhqk,bhkd->bhqd", p, v).transpose(0, 2, 1, 3).reshape(B, -1, H * D)
        out = ctx @ lp["wfc"]
        h1 = _ref_ln(xn + out, lp["mha_ln_g"], lp["mha_ln_b"])
        hid = jax.nn.relu(h1 @ lp["w1"] + lp["b1"].reshape(-1))
        ffn = hid @ lp["w2"] + lp["b2"].reshape(-1) + h1
        o = _ref_ln(ffn, lp["ffn_ln_g"], lp["ffn_ln_b"])
        a = jnp.transpose(o, (1, 0, 2))
    return _ref_ln(a, fg, fb)


# ----------------------------------------------------------------------------
if __name__ == "__main__":
    embed_dim = 32
    num_heads = 2
    num_layers = 2
    L, B = 8, 2

    key = jax.random.PRNGKey(0)
    k_a, k_b, k_p = jax.random.split(key, 3)
    alpha = jax.random.normal(k_a, (L, B, embed_dim), dtype=jnp.float32)
    beta = jax.random.normal(k_b, (L, B, embed_dim), dtype=jnp.float32)

    layers, fg, fb = init_params(k_p, embed_dim, num_heads, num_layers)
    pe = sinusoid_table(1000, 512)

    out = transformer_encoder(alpha, beta, layers, fg, fb, num_heads=num_heads, pe=pe)
    out = jax.block_until_ready(out)

    ref = reference_encoder(alpha, beta, layers, fg, fb, num_heads=num_heads, pe=pe)
    ref = jax.block_until_ready(ref)

    assert out.shape == (L, B, embed_dim), out.shape
    # Kernel uses bf16 MXU operands with f32 accumulation (and an approx-reciprocal
    # softmax denominator), so compare against the pure-f32 reference with a tolerance
    # that covers bf16 rounding.
    np.testing.assert_allclose(np.asarray(out), np.asarray(ref), rtol=2e-2, atol=2e-2)
    print("KERNEL_OK")
</pallas_src>

<mosaic_0001>
module attributes {stable_mosaic.version = 11 : i64} {
  func.func @_fused_encoder_kernel(%arg0: i32, %arg1: memref<1x8x32xf32, #tpu.memory_space<vmem>>, %arg2: memref<1x8x32xf32, #tpu.memory_space<vmem>>, %arg3: memref<8x32xf32, #tpu.memory_space<vmem>>, %arg4: memref<8x32xf32, #tpu.memory_space<vmem>>, %arg5: memref<2x32x64xbf16, #tpu.memory_space<vmem>>, %arg6: memref<2x32x128xbf16, #tpu.memory_space<vmem>>, %arg7: memref<2x64x32xbf16, #tpu.memory_space<vmem>>, %arg8: memref<2x32x128xbf16, #tpu.memory_space<vmem>>, %arg9: memref<2x1x128xf32, #tpu.memory_space<vmem>>, %arg10: memref<2x128x32xbf16, #tpu.memory_space<vmem>>, %arg11: memref<2x1x32xf32, #tpu.memory_space<vmem>>, %arg12: memref<2x1x32xf32, #tpu.memory_space<vmem>>, %arg13: memref<2x1x32xf32, #tpu.memory_space<vmem>>, %arg14: memref<2x1x32xf32, #tpu.memory_space<vmem>>, %arg15: memref<2x1x32xf32, #tpu.memory_space<vmem>>, %arg16: memref<2x1x32xf32, #tpu.memory_space<vmem>>, %arg17: memref<2x1x32xf32, #tpu.memory_space<vmem>>, %arg18: memref<1x32xf32, #tpu.memory_space<vmem>>, %arg19: memref<1x32xf32, #tpu.memory_space<vmem>>, %arg20: memref<1x8x32xf32, #tpu.memory_space<vmem>>) attributes {dimension_semantics = [#tpu.dimension_semantics<parallel>], iteration_bounds = array<i64: 2>, scalar_prefetch = 0 : i64, scratch_operands = 0 : i64, tpu.core_type = #tpu.core_type<tc>, window_params = [{transform_indices = @transform_0, window_bounds = array<i64: 1, 8, 32>}, {transform_indices = @transform_1, window_bounds = array<i64: 1, 8, 32>}, {pipeline_mode = #tpu.pipeline_mode<synchronous>, transform_indices = @transform_2, window_bounds = array<i64: 8, 32>}, {pipeline_mode = #tpu.pipeline_mode<synchronous>, transform_indices = @transform_3, window_bounds = array<i64: 8, 32>}, {pipeline_mode = #tpu.pipeline_mode<synchronous>, transform_indices = @transform_4, window_bounds = array<i64: 2, 32, 64>}, {pipeline_mode = #tpu.pipeline_mode<synchronous>, transform_indices = @transform_5, window_bounds = array<i64: 2, 32, 128>}, {pipeline_mode = #tpu.pipeline_mode<synchronous>, transform_indices = @transform_6, window_bounds = array<i64: 2, 64, 32>}, {pipeline_mode = #tpu.pipeline_mode<synchronous>, transform_indices = @transform_7, window_bounds = array<i64: 2, 32, 128>}, {pipeline_mode = #tpu.pipeline_mode<synchronous>, transform_indices = @transform_8, window_bounds = array<i64: 2, 1, 128>}, {pipeline_mode = #tpu.pipeline_mode<synchronous>, transform_indices = @transform_9, window_bounds = array<i64: 2, 128, 32>}, {pipeline_mode = #tpu.pipeline_mode<synchronous>, transform_indices = @transform_10, window_bounds = array<i64: 2, 1, 32>}, {pipeline_mode = #tpu.pipeline_mode<synchronous>, transform_indices = @transform_11, window_bounds = array<i64: 2, 1, 32>}, {pipeline_mode = #tpu.pipeline_mode<synchronous>, transform_indices = @transform_12, window_bounds = array<i64: 2, 1, 32>}, {pipeline_mode = #tpu.pipeline_mode<synchronous>, transform_indices = @transform_13, window_bounds = array<i64: 2, 1, 32>}, {pipeline_mode = #tpu.pipeline_mode<synchronous>, transform_indices = @transform_14, window_bounds = array<i64: 2, 1, 32>}, {pipeline_mode = #tpu.pipeline_mode<synchronous>, transform_indices = @transform_15, window_bounds = array<i64: 2, 1, 32>}, {pipeline_mode = #tpu.pipeline_mode<synchronous>, transform_indices = @transform_16, window_bounds = array<i64: 2, 1, 32>}, {pipeline_mode = #tpu.pipeline_mode<synchronous>, transform_indices = @transform_17, window_bounds = array<i64: 1, 32>}, {pipeline_mode = #tpu.pipeline_mode<synchronous>, transform_indices = @transform_18, window_bounds = array<i64: 1, 32>}, {transform_indices = @transform_19, window_bounds = array<i64: 1, 8, 32>}]} {
    %c0 = arith.constant 0 : index
    %c0_0 = arith.constant 0 : index
    %c0_1 = arith.constant 0 : index
    %0 = vector.load %arg1[%c0, %c0_0, %c0_1] : memref<1x8x32xf32, #tpu.memory_space<vmem>>, vector<1x8x32xf32>
    %1 = vector.shape_cast %0 : vector<1x8x32xf32> to vector<8x32xf32>
    %cst = arith.constant 5.65685415 : f32
    %2 = vector.broadcast %cst : f32 to vector<8x32xf32>
    %3 = arith.mulf %2, %1 : vector<8x32xf32>
    %c0_2 = arith.constant 0 : index
    %c0_3 = arith.constant 0 : index
    %4 = vector.load %arg3[%c0_2, %c0_3] : memref<8x32xf32, #tpu.memory_space<vmem>>, vector<8x32xf32>
    %5 = arith.addf %3, %4 : vector<8x32xf32>
    %c0_4 = arith.constant 0 : index
    %c0_5 = arith.constant 0 : index
    %c0_6 = arith.constant 0 : index
    %6 = vector.load %arg2[%c0_4, %c0_5, %c0_6] : memref<1x8x32xf32, #tpu.memory_space<vmem>>, vector<1x8x32xf32>
    %7 = vector.shape_cast %6 : vector<1x8x32xf32> to vector<8x32xf32>
    %cst_7 = arith.constant 5.65685415 : f32
    %8 = vector.broadcast %cst_7 : f32 to vector<8x32xf32>
    %9 = arith.mulf %8, %7 : vector<8x32xf32>
    %c0_8 = arith.constant 0 : index
    %c0_9 = arith.constant 0 : index
    %10 = vector.load %arg4[%c0_8, %c0_9] : memref<8x32xf32, #tpu.memory_space<vmem>>, vector<8x32xf32>
    %11 = arith.addf %9, %10 : vector<8x32xf32>
    %c0_10 = arith.constant 0 : index
    %c0_11 = arith.constant 0 : index
    %c0_12 = arith.constant 0 : index
    %12 = vector.load %arg12[%c0_10, %c0_11, %c0_12] : memref<2x1x32xf32, #tpu.memory_space<vmem>>, vector<1x1x32xf32>
    %13 = vector.shape_cast %12 : vector<1x1x32xf32> to vector<1x32xf32>
    %c0_13 = arith.constant 0 : index
    %c0_14 = arith.constant 0 : index
    %c0_15 = arith.constant 0 : index
    %14 = vector.load %arg13[%c0_13, %c0_14, %c0_15] : memref<2x1x32xf32, #tpu.memory_space<vmem>>, vector<1x1x32xf32>
    %15 = vector.shape_cast %14 : vector<1x1x32xf32> to vector<1x32xf32>
    %cst_16 = arith.constant dense<0.000000e+00> : vector<8xf32>
    %16 = vector.multi_reduction <add>, %5, %cst_16 [1] : vector<8x32xf32> to vector<8xf32>
    %17 = vector.shape_cast %16 : vector<8xf32> to vector<8x1xf32>
    %cst_17 = arith.constant 3.200000e+01 : f32
    %18 = vector.broadcast %cst_17 : f32 to vector<8x1xf32>
    %19 = arith.divf %17, %18 : vector<8x1xf32>
    %20 = arith.mulf %5, %5 : vector<8x32xf32>
    %cst_18 = arith.constant dense<0.000000e+00> : vector<8xf32>
    %21 = vector.multi_reduction <add>, %20, %cst_18 [1] : vector<8x32xf32> to vector<8xf32>
    %22 = vector.shape_cast %21 : vector<8xf32> to vector<8x1xf32>
    %cst_19 = arith.constant 3.200000e+01 : f32
    %23 = vector.broadcast %cst_19 : f32 to vector<8x1xf32>
    %24 = arith.divf %22, %23 : vector<8x1xf32>
    %25 = arith.mulf %19, %19 : vector<8x1xf32>
    %26 = arith.subf %24, %25 : vector<8x1xf32>
    %cst_20 = arith.constant 0.000000e+00 : f32
    %27 = vector.broadcast %cst_20 : f32 to vector<8x1xf32>
    %28 = arith.maximumf %26, %27 : vector<8x1xf32>
    %29 = vector.broadcast %19 : vector<8x1xf32> to vector<8x32xf32>
    %30 = arith.subf %5, %29 : vector<8x32xf32>
    %cst_21 = arith.constant 9.99999974E-6 : f32
    %31 = vector.broadcast %cst_21 : f32 to vector<8x1xf32>
    %32 = arith.addf %28, %31 : vector<8x1xf32>
    %33 = math.rsqrt %32 : vector<8x1xf32>
    %34 = vector.broadcast %33 : vector<8x1xf32> to vector<8x32xf32>
    %35 = arith.mulf %30, %34 : vector<8x32xf32>
    %36 = vector.broadcast %13 : vector<1x32xf32> to vector<8x32xf32>
    %37 = arith.mulf %35, %36 : vector<8x32xf32>
    %38 = vector.broadcast %15 : vector<1x32xf32> to vector<8x32xf32>
    %39 = arith.addf %37, %38 : vector<8x32xf32>
    %c0_22 = arith.constant 0 : index
    %c0_23 = arith.constant 0 : index
    %c0_24 = arith.constant 0 : index
    %40 = vector.load %arg12[%c0_22, %c0_23, %c0_24] : memref<2x1x32xf32, #tpu.memory_space<vmem>>, vector<1x1x32xf32>
    %41 = vector.shape_cast %40 : vector<1x1x32xf32> to vector<1x32xf32>
    %c0_25 = arith.constant 0 : index
    %c0_26 = arith.constant 0 : index
    %c0_27 = arith.constant 0 : index
    %42 = vector.load %arg13[%c0_25, %c0_26, %c0_27] : memref<2x1x32xf32, #tpu.memory_space<vmem>>, vector<1x1x32xf32>
    %43 = vector.shape_cast %42 : vector<1x1x32xf32> to vector<1x32xf32>
    %cst_28 = arith.constant dense<0.000000e+00> : vector<8xf32>
    %44 = vector.multi_reduction <add>, %11, %cst_28 [1] : vector<8x32xf32> to vector<8xf32>
    %45 = vector.shape_cast %44 : vector<8xf32> to vector<8x1xf32>
    %cst_29 = arith.constant 3.200000e+01 : f32
    %46 = vector.broadcast %cst_29 : f32 to vector<8x1xf32>
    %47 = arith.divf %45, %46 : vector<8x1xf32>
    %48 = arith.mulf %11, %11 : vector<8x32xf32>
    %cst_30 = arith.constant dense<0.000000e+00> : vector<8xf32>
    %49 = vector.multi_reduction <add>, %48, %cst_30 [1] : vector<8x32xf32> to vector<8xf32>
    %50 = vector.shape_cast %49 : vector<8xf32> to vector<8x1xf32>
    %cst_31 = arith.constant 3.200000e+01 : f32
    %51 = vector.broadcast %cst_31 : f32 to vector<8x1xf32>
    %52 = arith.divf %50, %51 : vector<8x1xf32>
    %53 = arith.mulf %47, %47 : vector<8x1xf32>
    %54 = arith.subf %52, %53 : vector<8x1xf32>
    %cst_32 = arith.constant 0.000000e+00 : f32
    %55 = vector.broadcast %cst_32 : f32 to vector<8x1xf32>
    %56 = arith.maximumf %54, %55 : vector<8x1xf32>
    %57 = vector.broadcast %47 : vector<8x1xf32> to vector<8x32xf32>
    %58 = arith.subf %11, %57 : vector<8x32xf32>
    %cst_33 = arith.constant 9.99999974E-6 : f32
    %59 = vector.broadcast %cst_33 : f32 to vector<8x1xf32>
    %60 = arith.addf %56, %59 : vector<8x1xf32>
    %61 = math.rsqrt %60 : vector<8x1xf32>
    %62 = vector.broadcast %61 : vector<8x1xf32> to vector<8x32xf32>
    %63 = arith.mulf %58, %62 : vector<8x32xf32>
    %64 = vector.broadcast %41 : vector<1x32xf32> to vector<8x32xf32>
    %65 = arith.mulf %63, %64 : vector<8x32xf32>
    %66 = vector.broadcast %43 : vector<1x32xf32> to vector<8x32xf32>
    %67 = arith.addf %65, %66 : vector<8x32xf32>
    %68 = arith.truncf %39 : vector<8x32xf32> to vector<8x32xbf16>
    %69 = arith.truncf %67 : vector<8x32xf32> to vector<8x32xbf16>
    %c0_34 = arith.constant 0 : index
    %c0_35 = arith.constant 0 : index
    %c0_36 = arith.constant 0 : index
    %70 = vector.load %arg5[%c0_34, %c0_35, %c0_36] : memref<2x32x64xbf16, #tpu.memory_space<vmem>>, vector<1x32x64xbf16>
    %71 = vector.shape_cast %70 : vector<1x32x64xbf16> to vector<32x64xbf16>
    %cst_37 = arith.constant dense<0.000000e+00> : vector<8x64xf32>
    %72 = tpu.matmul %68, %71, %cst_37 {dimension_numbers = #tpu.dot_dimension_numbers<[1], [0], [0], [1], [0, 0, 1, 1], [], []>} : vector<8x32xbf16>, vector<32x64xbf16>, vector<8x64xf32> -> vector<8x64xf32>
    %c0_38 = arith.constant 0 : index
    %c0_39 = arith.constant 0 : index
    %c0_40 = arith.constant 0 : index
    %73 = vector.load %arg6[%c0_38, %c0_39, %c0_40] : memref<2x32x128xbf16, #tpu.memory_space<vmem>>, vector<1x32x128xbf16>
    %74 = vector.shape_cast %73 : vector<1x32x128xbf16> to vector<32x128xbf16>
    %cst_41 = arith.constant dense<0.000000e+00> : vector<8x128xf32>
    %75 = tpu.matmul %69, %74, %cst_41 {dimension_numbers = #tpu.dot_dimension_numbers<[1], [0], [0], [1], [0, 0, 1, 1], [], []>} : vector<8x32xbf16>, vector<32x128xbf16>, vector<8x128xf32> -> vector<8x128xf32>
    %76 = arith.truncf %72 : vector<8x64xf32> to vector<8x64xbf16>
    %77 = arith.truncf %75 : vector<8x128xf32> to vector<8x128xbf16>
    %78 = vector.extract_strided_slice %76 {offsets = [0, 0], sizes = [8, 32], strides = [1, 1]} : vector<8x64xbf16> to vector<8x32xbf16>
    %79 = vector.extract_strided_slice %77 {offsets = [0, 0], sizes = [8, 32], strides = [1, 1]} : vector<8x128xbf16> to vector<8x32xbf16>
    %80 = vector.extract_strided_slice %77 {offsets = [0, 64], sizes = [8, 32], strides = [1, 1]} : vector<8x128xbf16> to vector<8x32xbf16>
    "tpu.trace_start"() <{level = 10 : i32, message = "qd,kd->qk"}> : () -> ()
    %cst_42 = arith.constant dense<0.000000e+00> : vector<8x8xf32>
    %81 = tpu.matmul %78, %79, %cst_42 {dimension_numbers = #tpu.dot_dimension_numbers<[1], [1], [0], [0], [0, 0, 1, 0], [], []>} : vector<8x32xbf16>, vector<8x32xbf16>, vector<8x8xf32> -> vector<8x8xf32>
    "tpu.trace_stop"() : () -> ()
    %cst_43 = arith.constant dense<0xFF800000> : vector<8xf32>
    %82 = vector.multi_reduction <maximumf>, %81, %cst_43 [1] : vector<8x8xf32> to vector<8xf32>
    %83 = vector.shape_cast %82 : vector<8xf32> to vector<8x1xf32>
    %84 = vector.broadcast %83 : vector<8x1xf32> to vector<8x8xf32>
    %85 = arith.subf %81, %84 : vector<8x8xf32>
    %86 = math.exp %85 : vector<8x8xf32>
    %cst_44 = arith.constant dense<0.000000e+00> : vector<8xf32>
    %87 = vector.multi_reduction <add>, %86, %cst_44 [1] : vector<8x8xf32> to vector<8xf32>
    %88 = vector.shape_cast %87 : vector<8xf32> to vector<8x1xf32>
    %89 = tpu.reciprocal %88 {approx = true} : vector<8x1xf32> -> vector<8x1xf32>
    %90 = vector.broadcast %89 : vector<8x1xf32> to vector<8x8xf32>
    %91 = arith.mulf %86, %90 : vector<8x8xf32>
    %92 = arith.truncf %91 : vector<8x8xf32> to vector<8x8xbf16>
    %cst_45 = arith.constant dense<0.000000e+00> : vector<8x32xf32>
    %93 = tpu.matmul %92, %80, %cst_45 {dimension_numbers = #tpu.dot_dimension_numbers<[1], [0], [0], [1], [0, 0, 1, 1], [], []>} : vector<8x8xbf16>, vector<8x32xbf16>, vector<8x32xf32> -> vector<8x32xf32>
    %94 = vector.extract_strided_slice %76 {offsets = [0, 32], sizes = [8, 32], strides = [1, 1]} : vector<8x64xbf16> to vector<8x32xbf16>
    %95 = vector.extract_strided_slice %77 {offsets = [0, 32], sizes = [8, 32], strides = [1, 1]} : vector<8x128xbf16> to vector<8x32xbf16>
    %96 = vector.extract_strided_slice %77 {offsets = [0, 96], sizes = [8, 32], strides = [1, 1]} : vector<8x128xbf16> to vector<8x32xbf16>
    "tpu.trace_start"() <{level = 10 : i32, message = "qd,kd->qk"}> : () -> ()
    %cst_46 = arith.constant dense<0.000000e+00> : vector<8x8xf32>
    %97 = tpu.matmul %94, %95, %cst_46 {dimension_numbers = #tpu.dot_dimension_numbers<[1], [1], [0], [0], [0, 0, 1, 0], [], []>} : vector<8x32xbf16>, vector<8x32xbf16>, vector<8x8xf32> -> vector<8x8xf32>
    "tpu.trace_stop"() : () -> ()
    %cst_47 = arith.constant dense<0xFF800000> : vector<8xf32>
    %98 = vector.multi_reduction <maximumf>, %97, %cst_47 [1] : vector<8x8xf32> to vector<8xf32>
    %99 = vector.shape_cast %98 : vector<8xf32> to vector<8x1xf32>
    %100 = vector.broadcast %99 : vector<8x1xf32> to vector<8x8xf32>
    %101 = arith.subf %97, %100 : vector<8x8xf32>
    %102 = math.exp %101 : vector<8x8xf32>
    %cst_48 = arith.constant dense<0.000000e+00> : vector<8xf32>
    %103 = vector.multi_reduction <add>, %102, %cst_48 [1] : vector<8x8xf32> to vector<8xf32>
    %104 = vector.shape_cast %103 : vector<8xf32> to vector<8x1xf32>
    %105 = tpu.reciprocal %104 {approx = true} : vector<8x1xf32> -> vector<8x1xf32>
    %106 = vector.broadcast %105 : vector<8x1xf32> to vector<8x8xf32>
    %107 = arith.mulf %102, %106 : vector<8x8xf32>
    %108 = arith.truncf %107 : vector<8x8xf32> to vector<8x8xbf16>
    %cst_49 = arith.constant dense<0.000000e+00> : vector<8x32xf32>
    %109 = tpu.matmul %108, %96, %cst_49 {dimension_numbers = #tpu.dot_dimension_numbers<[1], [0], [0], [1], [0, 0, 1, 1], [], []>} : vector<8x8xbf16>, vector<8x32xbf16>, vector<8x32xf32> -> vector<8x32xf32>
    %110 = tpu.concatenate %93, %109 in 1 : vector<8x32xf32>, vector<8x32xf32> -> vector<8x64xf32>
    %111 = arith.truncf %110 : vector<8x64xf32> to vector<8x64xbf16>
    %c0_50 = arith.constant 0 : index
    %c0_51 = arith.constant 0 : index
    %c0_52 = arith.constant 0 : index
    %112 = vector.load %arg7[%c0_50, %c0_51, %c0_52] : memref<2x64x32xbf16, #tpu.memory_space<vmem>>, vector<1x64x32xbf16>
    %113 = vector.shape_cast %112 : vector<1x64x32xbf16> to vector<64x32xbf16>
    %cst_53 = arith.constant dense<0.000000e+00> : vector<8x32xf32>
    %114 = tpu.matmul %111, %113, %cst_53 {dimension_numbers = #tpu.dot_dimension_numbers<[1], [0], [0], [1], [0, 0, 1, 1], [], []>} : vector<8x64xbf16>, vector<64x32xbf16>, vector<8x32xf32> -> vector<8x32xf32>
    %115 = arith.addf %39, %114 : vector<8x32xf32>
    %c0_54 = arith.constant 0 : index
    %c0_55 = arith.constant 0 : index
    %c0_56 = arith.constant 0 : index
    %116 = vector.load %arg14[%c0_54, %c0_55, %c0_56] : memref<2x1x32xf32, #tpu.memory_space<vmem>>, vector<1x1x32xf32>
    %117 = vector.shape_cast %116 : vector<1x1x32xf32> to vector<1x32xf32>
    %c0_57 = arith.constant 0 : index
    %c0_58 = arith.constant 0 : index
    %c0_59 = arith.constant 0 : index
    %118 = vector.load %arg15[%c0_57, %c0_58, %c0_59] : memref<2x1x32xf32, #tpu.memory_space<vmem>>, vector<1x1x32xf32>
    %119 = vector.shape_cast %118 : vector<1x1x32xf32> to vector<1x32xf32>
    %cst_60 = arith.constant dense<0.000000e+00> : vector<8xf32>
    %120 = vector.multi_reduction <add>, %115, %cst_60 [1] : vector<8x32xf32> to vector<8xf32>
    %121 = vector.shape_cast %120 : vector<8xf32> to vector<8x1xf32>
    %cst_61 = arith.constant 3.200000e+01 : f32
    %122 = vector.broadcast %cst_61 : f32 to vector<8x1xf32>
    %123 = arith.divf %121, %122 : vector<8x1xf32>
    %124 = arith.mulf %115, %115 : vector<8x32xf32>
    %cst_62 = arith.constant dense<0.000000e+00> : vector<8xf32>
    %125 = vector.multi_reduction <add>, %124, %cst_62 [1] : vector<8x32xf32> to vector<8xf32>
    %126 = vector.shape_cast %125 : vector<8xf32> to vector<8x1xf32>
    %cst_63 = arith.constant 3.200000e+01 : f32
    %127 = vector.broadcast %cst_63 : f32 to vector<8x1xf32>
    %128 = arith.divf %126, %127 : vector<8x1xf32>
    %129 = arith.mulf %123, %123 : vector<8x1xf32>
    %130 = arith.subf %128, %129 : vector<8x1xf32>
    %cst_64 = arith.constant 0.000000e+00 : f32
    %131 = vector.broadcast %cst_64 : f32 to vector<8x1xf32>
    %132 = arith.maximumf %130, %131 : vector<8x1xf32>
    %133 = vector.broadcast %123 : vector<8x1xf32> to vector<8x32xf32>
    %134 = arith.subf %115, %133 : vector<8x32xf32>
    %cst_65 = arith.constant 9.99999974E-6 : f32
    %135 = vector.broadcast %cst_65 : f32 to vector<8x1xf32>
    %136 = arith.addf %132, %135 : vector<8x1xf32>
    %137 = math.rsqrt %136 : vector<8x1xf32>
    %138 = vector.broadcast %137 : vector<8x1xf32> to vector<8x32xf32>
    %139 = arith.mulf %134, %138 : vector<8x32xf32>
    %140 = vector.broadcast %117 : vector<1x32xf32> to vector<8x32xf32>
    %141 = arith.mulf %139, %140 : vector<8x32xf32>
    %142 = vector.broadcast %119 : vector<1x32xf32> to vector<8x32xf32>
    %143 = arith.addf %141, %142 : vector<8x32xf32>
    %144 = arith.truncf %143 : vector<8x32xf32> to vector<8x32xbf16>
    %c0_66 = arith.constant 0 : index
    %c0_67 = arith.constant 0 : index
    %c0_68 = arith.constant 0 : index
    %145 = vector.load %arg8[%c0_66, %c0_67, %c0_68] : memref<2x32x128xbf16, #tpu.memory_space<vmem>>, vector<1x32x128xbf16>
    %146 = vector.shape_cast %145 : vector<1x32x128xbf16> to vector<32x128xbf16>
    %cst_69 = arith.constant dense<0.000000e+00> : vector<8x128xf32>
    %147 = tpu.matmul %144, %146, %cst_69 {dimension_numbers = #tpu.dot_dimension_numbers<[1], [0], [0], [1], [0, 0, 1, 1], [], []>} : vector<8x32xbf16>, vector<32x128xbf16>, vector<8x128xf32> -> vector<8x128xf32>
    %c0_70 = arith.constant 0 : index
    %c0_71 = arith.constant 0 : index
    %c0_72 = arith.constant 0 : index
    %148 = vector.load %arg9[%c0_70, %c0_71, %c0_72] : memref<2x1x128xf32, #tpu.memory_space<vmem>>, vector<1x1x128xf32>
    %149 = vector.shape_cast %148 : vector<1x1x128xf32> to vector<1x128xf32>
    %150 = vector.broadcast %149 : vector<1x128xf32> to vector<8x128xf32>
    %151 = arith.addf %147, %150 : vector<8x128xf32>
    %cst_73 = arith.constant 0.000000e+00 : f32
    %152 = vector.broadcast %cst_73 : f32 to vector<8x128xf32>
    %153 = arith.maximumf %151, %152 : vector<8x128xf32>
    %154 = arith.truncf %153 : vector<8x128xf32> to vector<8x128xbf16>
    %c0_74 = arith.constant 0 : index
    %c0_75 = arith.constant 0 : index
    %c0_76 = arith.constant 0 : index
    %155 = vector.load %arg10[%c0_74, %c0_75, %c0_76] : memref<2x128x32xbf16, #tpu.memory_space<vmem>>, vector<1x128x32xbf16>
    %156 = vector.shape_cast %155 : vector<1x128x32xbf16> to vector<128x32xbf16>
    %cst_77 = arith.constant dense<0.000000e+00> : vector<8x32xf32>
    %157 = tpu.matmul %154, %156, %cst_77 {dimension_numbers = #tpu.dot_dimension_numbers<[1], [0], [0], [1], [0, 0, 1, 1], [], []>} : vector<8x128xbf16>, vector<128x32xbf16>, vector<8x32xf32> -> vector<8x32xf32>
    %c0_78 = arith.constant 0 : index
    %c0_79 = arith.constant 0 : index
    %c0_80 = arith.constant 0 : index
    %158 = vector.load %arg11[%c0_78, %c0_79, %c0_80] : memref<2x1x32xf32, #tpu.memory_space<vmem>>, vector<1x1x32xf32>
    %159 = vector.shape_cast %158 : vector<1x1x32xf32> to vector<1x32xf32>
    %160 = vector.broadcast %159 : vector<1x32xf32> to vector<8x32xf32>
    %161 = arith.addf %157, %160 : vector<8x32xf32>
    %162 = arith.addf %161, %143 : vector<8x32xf32>
    %c0_81 = arith.constant 0 : index
    %c0_82 = arith.constant 0 : index
    %c0_83 = arith.constant 0 : index
    %163 = vector.load %arg16[%c0_81, %c0_82, %c0_83] : memref<2x1x32xf32, #tpu.memory_space<vmem>>, vector<1x1x32xf32>
    %164 = vector.shape_cast %163 : vector<1x1x32xf32> to vector<1x32xf32>
    %c0_84 = arith.constant 0 : index
    %c0_85 = arith.constant 0 : index
    %c0_86 = arith.constant 0 : index
    %165 = vector.load %arg17[%c0_84, %c0_85, %c0_86] : memref<2x1x32xf32, #tpu.memory_space<vmem>>, vector<1x1x32xf32>
    %166 = vector.shape_cast %165 : vector<1x1x32xf32> to vector<1x32xf32>
    %cst_87 = arith.constant dense<0.000000e+00> : vector<8xf32>
    %167 = vector.multi_reduction <add>, %162, %cst_87 [1] : vector<8x32xf32> to vector<8xf32>
    %168 = vector.shape_cast %167 : vector<8xf32> to vector<8x1xf32>
    %cst_88 = arith.constant 3.200000e+01 : f32
    %169 = vector.broadcast %cst_88 : f32 to vector<8x1xf32>
    %170 = arith.divf %168, %169 : vector<8x1xf32>
    %171 = arith.mulf %162, %162 : vector<8x32xf32>
    %cst_89 = arith.constant dense<0.000000e+00> : vector<8xf32>
    %172 = vector.multi_reduction <add>, %171, %cst_89 [1] : vector<8x32xf32> to vector<8xf32>
    %173 = vector.shape_cast %172 : vector<8xf32> to vector<8x1xf32>
    %cst_90 = arith.constant 3.200000e+01 : f32
    %174 = vector.broadcast %cst_90 : f32 to vector<8x1xf32>
    %175 = arith.divf %173, %174 : vector<8x1xf32>
    %176 = arith.mulf %170, %170 : vector<8x1xf32>
    %177 = arith.subf %175, %176 : vector<8x1xf32>
    %cst_91 = arith.constant 0.000000e+00 : f32
    %178 = vector.broadcast %cst_91 : f32 to vector<8x1xf32>
    %179 = arith.maximumf %177, %178 : vector<8x1xf32>
    %180 = vector.broadcast %170 : vector<8x1xf32> to vector<8x32xf32>
    %181 = arith.subf %162, %180 : vector<8x32xf32>
    %cst_92 = arith.constant 9.99999974E-6 : f32
    %182 = vector.broadcast %cst_92 : f32 to vector<8x1xf32>
    %183 = arith.addf %179, %182 : vector<8x1xf32>
    %184 = math.rsqrt %183 : vector<8x1xf32>
    %185 = vector.broadcast %184 : vector<8x1xf32> to vector<8x32xf32>
    %186 = arith.mulf %181, %185 : vector<8x32xf32>
    %187 = vector.broadcast %164 : vector<1x32xf32> to vector<8x32xf32>
    %188 = arith.mulf %186, %187 : vector<8x32xf32>
    %189 = vector.broadcast %166 : vector<1x32xf32> to vector<8x32xf32>
    %190 = arith.addf %188, %189 : vector<8x32xf32>
    %c1 = arith.constant 1 : index
    %c0_93 = arith.constant 0 : index
    %c0_94 = arith.constant 0 : index
    %191 = vector.load %arg12[%c1, %c0_93, %c0_94] : memref<2x1x32xf32, #tpu.memory_space<vmem>>, vector<1x1x32xf32>
    %192 = vector.shape_cast %191 : vector<1x1x32xf32> to vector<1x32xf32>
    %c1_95 = arith.constant 1 : index
    %c0_96 = arith.constant 0 : index
    %c0_97 = arith.constant 0 : index
    %193 = vector.load %arg13[%c1_95, %c0_96, %c0_97] : memref<2x1x32xf32, #tpu.memory_space<vmem>>, vector<1x1x32xf32>
    %194 = vector.shape_cast %193 : vector<1x1x32xf32> to vector<1x32xf32>
    %cst_98 = arith.constant dense<0.000000e+00> : vector<8xf32>
    %195 = vector.multi_reduction <add>, %190, %cst_98 [1] : vector<8x32xf32> to vector<8xf32>
    %196 = vector.shape_cast %195 : vector<8xf32> to vector<8x1xf32>
    %cst_99 = arith.constant 3.200000e+01 : f32
    %197 = vector.broadcast %cst_99 : f32 to vector<8x1xf32>
    %198 = arith.divf %196, %197 : vector<8x1xf32>
    %199 = arith.mulf %190, %190 : vector<8x32xf32>
    %cst_100 = arith.constant dense<0.000000e+00> : vector<8xf32>
    %200 = vector.multi_reduction <add>, %199, %cst_100 [1] : vector<8x32xf32> to vector<8xf32>
    %201 = vector.shape_cast %200 : vector<8xf32> to vector<8x1xf32>
    %cst_101 = arith.constant 3.200000e+01 : f32
    %202 = vector.broadcast %cst_101 : f32 to vector<8x1xf32>
    %203 = arith.divf %201, %202 : vector<8x1xf32>
    %204 = arith.mulf %198, %198 : vector<8x1xf32>
    %205 = arith.subf %203, %204 : vector<8x1xf32>
    %cst_102 = arith.constant 0.000000e+00 : f32
    %206 = vector.broadcast %cst_102 : f32 to vector<8x1xf32>
    %207 = arith.maximumf %205, %206 : vector<8x1xf32>
    %208 = vector.broadcast %198 : vector<8x1xf32> to vector<8x32xf32>
    %209 = arith.subf %190, %208 : vector<8x32xf32>
    %cst_103 = arith.constant 9.99999974E-6 : f32
    %210 = vector.broadcast %cst_103 : f32 to vector<8x1xf32>
    %211 = arith.addf %207, %210 : vector<8x1xf32>
    %212 = math.rsqrt %211 : vector<8x1xf32>
    %213 = vector.broadcast %212 : vector<8x1xf32> to vector<8x32xf32>
    %214 = arith.mulf %209, %213 : vector<8x32xf32>
    %215 = vector.broadcast %192 : vector<1x32xf32> to vector<8x32xf32>
    %216 = arith.mulf %214, %215 : vector<8x32xf32>
    %217 = vector.broadcast %194 : vector<1x32xf32> to vector<8x32xf32>
    %218 = arith.addf %216, %217 : vector<8x32xf32>
    %c1_104 = arith.constant 1 : index
    %c0_105 = arith.constant 0 : index
    %c0_106 = arith.constant 0 : index
    %219 = vector.load %arg12[%c1_104, %c0_105, %c0_106] : memref<2x1x32xf32, #tpu.memory_space<vmem>>, vector<1x1x32xf32>
    %220 = vector.shape_cast %219 : vector<1x1x32xf32> to vector<1x32xf32>
    %c1_107 = arith.constant 1 : index
    %c0_108 = arith.constant 0 : index
    %c0_109 = arith.constant 0 : index
    %221 = vector.load %arg13[%c1_107, %c0_108, %c0_109] : memref<2x1x32xf32, #tpu.memory_space<vmem>>, vector<1x1x32xf32>
    %222 = vector.shape_cast %221 : vector<1x1x32xf32> to vector<1x32xf32>
    %cst_110 = arith.constant dense<0.000000e+00> : vector<8xf32>
    %223 = vector.multi_reduction <add>, %11, %cst_110 [1] : vector<8x32xf32> to vector<8xf32>
    %224 = vector.shape_cast %223 : vector<8xf32> to vector<8x1xf32>
    %cst_111 = arith.constant 3.200000e+01 : f32
    %225 = vector.broadcast %cst_111 : f32 to vector<8x1xf32>
    %226 = arith.divf %224, %225 : vector<8x1xf32>
    %227 = arith.mulf %11, %11 : vector<8x32xf32>
    %cst_112 = arith.constant dense<0.000000e+00> : vector<8xf32>
    %228 = vector.multi_reduction <add>, %227, %cst_112 [1] : vector<8x32xf32> to vector<8xf32>
    %229 = vector.shape_cast %228 : vector<8xf32> to vector<8x1xf32>
    %cst_113 = arith.constant 3.200000e+01 : f32
    %230 = vector.broadcast %cst_113 : f32 to vector<8x1xf32>
    %231 = arith.divf %229, %230 : vector<8x1xf32>
    %232 = arith.mulf %226, %226 : vector<8x1xf32>
    %233 = arith.subf %231, %232 : vector<8x1xf32>
    %cst_114 = arith.constant 0.000000e+00 : f32
    %234 = vector.broadcast %cst_114 : f32 to vector<8x1xf32>
    %235 = arith.maximumf %233, %234 : vector<8x1xf32>
    %236 = vector.broadcast %226 : vector<8x1xf32> to vector<8x32xf32>
    %237 = arith.subf %11, %236 : vector<8x32xf32>
    %cst_115 = arith.constant 9.99999974E-6 : f32
    %238 = vector.broadcast %cst_115 : f32 to vector<8x1xf32>
    %239 = arith.addf %235, %238 : vector<8x1xf32>
    %240 = math.rsqrt %239 : vector<8x1xf32>
    %241 = vector.broadcast %240 : vector<8x1xf32> to vector<8x32xf32>
    %242 = arith.mulf %237, %241 : vector<8x32xf32>
    %243 = vector.broadcast %220 : vector<1x32xf32> to vector<8x32xf32>
    %244 = arith.mulf %242, %243 : vector<8x32xf32>
    %245 = vector.broadcast %222 : vector<1x32xf32> to vector<8x32xf32>
    %246 = arith.addf %244, %245 : vector<8x32xf32>
    %247 = arith.truncf %218 : vector<8x32xf32> to vector<8x32xbf16>
    %248 = arith.truncf %246 : vector<8x32xf32> to vector<8x32xbf16>
    %c1_116 = arith.constant 1 : index
    %c0_117 = arith.constant 0 : index
    %c0_118 = arith.constant 0 : index
    %249 = vector.load %arg5[%c1_116, %c0_117, %c0_118] : memref<2x32x64xbf16, #tpu.memory_space<vmem>>, vector<1x32x64xbf16>
    %250 = vector.shape_cast %249 : vector<1x32x64xbf16> to vector<32x64xbf16>
    %cst_119 = arith.constant dense<0.000000e+00> : vector<8x64xf32>
    %251 = tpu.matmul %247, %250, %cst_119 {dimension_numbers = #tpu.dot_dimension_numbers<[1], [0], [0], [1], [0, 0, 1, 1], [], []>} : vector<8x32xbf16>, vector<32x64xbf16>, vector<8x64xf32> -> vector<8x64xf32>
    %c1_120 = arith.constant 1 : index
    %c0_121 = arith.constant 0 : index
    %c0_122 = arith.constant 0 : index
    %252 = vector.load %arg6[%c1_120, %c0_121, %c0_122] : memref<2x32x128xbf16, #tpu.memory_space<vmem>>, vector<1x32x128xbf16>
    %253 = vector.shape_cast %252 : vector<1x32x128xbf16> to vector<32x128xbf16>
    %cst_123 = arith.constant dense<0.000000e+00> : vector<8x128xf32>
    %254 = tpu.matmul %248, %253, %cst_123 {dimension_numbers = #tpu.dot_dimension_numbers<[1], [0], [0], [1], [0, 0, 1, 1], [], []>} : vector<8x32xbf16>, vector<32x128xbf16>, vector<8x128xf32> -> vector<8x128xf32>
    %255 = arith.truncf %251 : vector<8x64xf32> to vector<8x64xbf16>
    %256 = arith.truncf %254 : vector<8x128xf32> to vector<8x128xbf16>
    %257 = vector.extract_strided_slice %255 {offsets = [0, 0], sizes = [8, 32], strides = [1, 1]} : vector<8x64xbf16> to vector<8x32xbf16>
    %258 = vector.extract_strided_slice %256 {offsets = [0, 0], sizes = [8, 32], strides = [1, 1]} : vector<8x128xbf16> to vector<8x32xbf16>
    %259 = vector.extract_strided_slice %256 {offsets = [0, 64], sizes = [8, 32], strides = [1, 1]} : vector<8x128xbf16> to vector<8x32xbf16>
    "tpu.trace_start"() <{level = 10 : i32, message = "qd,kd->qk"}> : () -> ()
    %cst_124 = arith.constant dense<0.000000e+00> : vector<8x8xf32>
    %260 = tpu.matmul %257, %258, %cst_124 {dimension_numbers = #tpu.dot_dimension_numbers<[1], [1], [0], [0], [0, 0, 1, 0], [], []>} : vector<8x32xbf16>, vector<8x32xbf16>, vector<8x8xf32> -> vector<8x8xf32>
    "tpu.trace_stop"() : () -> ()
    %cst_125 = arith.constant dense<0xFF800000> : vector<8xf32>
    %261 = vector.multi_reduction <maximumf>, %260, %cst_125 [1] : vector<8x8xf32> to vector<8xf32>
    %262 = vector.shape_cast %261 : vector<8xf32> to vector<8x1xf32>
    %263 = vector.broadcast %262 : vector<8x1xf32> to vector<8x8xf32>
    %264 = arith.subf %260, %263 : vector<8x8xf32>
    %265 = math.exp %264 : vector<8x8xf32>
    %cst_126 = arith.constant dense<0.000000e+00> : vector<8xf32>
    %266 = vector.multi_reduction <add>, %265, %cst_126 [1] : vector<8x8xf32> to vector<8xf32>
    %267 = vector.shape_cast %266 : vector<8xf32> to vector<8x1xf32>
    %268 = tpu.reciprocal %267 {approx = true} : vector<8x1xf32> -> vector<8x1xf32>
    %269 = vector.broadcast %268 : vector<8x1xf32> to vector<8x8xf32>
    %270 = arith.mulf %265, %269 : vector<8x8xf32>
    %271 = arith.truncf %270 : vector<8x8xf32> to vector<8x8xbf16>
    %cst_127 = arith.constant dense<0.000000e+00> : vector<8x32xf32>
    %272 = tpu.matmul %271, %259, %cst_127 {dimension_numbers = #tpu.dot_dimension_numbers<[1], [0], [0], [1], [0, 0, 1, 1], [], []>} : vector<8x8xbf16>, vector<8x32xbf16>, vector<8x32xf32> -> vector<8x32xf32>
    %273 = vector.extract_strided_slice %255 {offsets = [0, 32], sizes = [8, 32], strides = [1, 1]} : vector<8x64xbf16> to vector<8x32xbf16>
    %274 = vector.extract_strided_slice %256 {offsets = [0, 32], sizes = [8, 32], strides = [1, 1]} : vector<8x128xbf16> to vector<8x32xbf16>
    %275 = vector.extract_strided_slice %256 {offsets = [0, 96], sizes = [8, 32], strides = [1, 1]} : vector<8x128xbf16> to vector<8x32xbf16>
    "tpu.trace_start"() <{level = 10 : i32, message = "qd,kd->qk"}> : () -> ()
    %cst_128 = arith.constant dense<0.000000e+00> : vector<8x8xf32>
    %276 = tpu.matmul %273, %274, %cst_128 {dimension_numbers = #tpu.dot_dimension_numbers<[1], [1], [0], [0], [0, 0, 1, 0], [], []>} : vector<8x32xbf16>, vector<8x32xbf16>, vector<8x8xf32> -> vector<8x8xf32>
    "tpu.trace_stop"() : () -> ()
    %cst_129 = arith.constant dense<0xFF800000> : vector<8xf32>
    %277 = vector.multi_reduction <maximumf>, %276, %cst_129 [1] : vector<8x8xf32> to vector<8xf32>
    %278 = vector.shape_cast %277 : vector<8xf32> to vector<8x1xf32>
    %279 = vector.broadcast %278 : vector<8x1xf32> to vector<8x8xf32>
    %280 = arith.subf %276, %279 : vector<8x8xf32>
    %281 = math.exp %280 : vector<8x8xf32>
    %cst_130 = arith.constant dense<0.000000e+00> : vector<8xf32>
    %282 = vector.multi_reduction <add>, %281, %cst_130 [1] : vector<8x8xf32> to vector<8xf32>
    %283 = vector.shape_cast %282 : vector<8xf32> to vector<8x1xf32>
    %284 = tpu.reciprocal %283 {approx = true} : vector<8x1xf32> -> vector<8x1xf32>
    %285 = vector.broadcast %284 : vector<8x1xf32> to vector<8x8xf32>
    %286 = arith.mulf %281, %285 : vector<8x8xf32>
    %287 = arith.truncf %286 : vector<8x8xf32> to vector<8x8xbf16>
    %cst_131 = arith.constant dense<0.000000e+00> : vector<8x32xf32>
    %288 = tpu.matmul %287, %275, %cst_131 {dimension_numbers = #tpu.dot_dimension_numbers<[1], [0], [0], [1], [0, 0, 1, 1], [], []>} : vector<8x8xbf16>, vector<8x32xbf16>, vector<8x32xf32> -> vector<8x32xf32>
    %289 = tpu.concatenate %272, %288 in 1 : vector<8x32xf32>, vector<8x32xf32> -> vector<8x64xf32>
    %290 = arith.truncf %289 : vector<8x64xf32> to vector<8x64xbf16>
    %c1_132 = arith.constant 1 : index
    %c0_133 = arith.constant 0 : index
    %c0_134 = arith.constant 0 : index
    %291 = vector.load %arg7[%c1_132, %c0_133, %c0_134] : memref<2x64x32xbf16, #tpu.memory_space<vmem>>, vector<1x64x32xbf16>
    %292 = vector.shape_cast %291 : vector<1x64x32xbf16> to vector<64x32xbf16>
    %cst_135 = arith.constant dense<0.000000e+00> : vector<8x32xf32>
    %293 = tpu.matmul %290, %292, %cst_135 {dimension_numbers = #tpu.dot_dimension_numbers<[1], [0], [0], [1], [0, 0, 1, 1], [], []>} : vector<8x64xbf16>, vector<64x32xbf16>, vector<8x32xf32> -> vector<8x32xf32>
    %294 = arith.addf %218, %293 : vector<8x32xf32>
    %c1_136 = arith.constant 1 : index
    %c0_137 = arith.constant 0 : index
    %c0_138 = arith.constant 0 : index
    %295 = vector.load %arg14[%c1_136, %c0_137, %c0_138] : memref<2x1x32xf32, #tpu.memory_space<vmem>>, vector<1x1x32xf32>
    %296 = vector.shape_cast %295 : vector<1x1x32xf32> to vector<1x32xf32>
    %c1_139 = arith.constant 1 : index
    %c0_140 = arith.constant 0 : index
    %c0_141 = arith.constant 0 : index
    %297 = vector.load %arg15[%c1_139, %c0_140, %c0_141] : memref<2x1x32xf32, #tpu.memory_space<vmem>>, vector<1x1x32xf32>
    %298 = vector.shape_cast %297 : vector<1x1x32xf32> to vector<1x32xf32>
    %cst_142 = arith.constant dense<0.000000e+00> : vector<8xf32>
    %299 = vector.multi_reduction <add>, %294, %cst_142 [1] : vector<8x32xf32> to vector<8xf32>
    %300 = vector.shape_cast %299 : vector<8xf32> to vector<8x1xf32>
    %cst_143 = arith.constant 3.200000e+01 : f32
    %301 = vector.broadcast %cst_143 : f32 to vector<8x1xf32>
    %302 = arith.divf %300, %301 : vector<8x1xf32>
    %303 = arith.mulf %294, %294 : vector<8x32xf32>
    %cst_144 = arith.constant dense<0.000000e+00> : vector<8xf32>
    %304 = vector.multi_reduction <add>, %303, %cst_144 [1] : vector<8x32xf32> to vector<8xf32>
    %305 = vector.shape_cast %304 : vector<8xf32> to vector<8x1xf32>
    %cst_145 = arith.constant 3.200000e+01 : f32
    %306 = vector.broadcast %cst_145 : f32 to vector<8x1xf32>
    %307 = arith.divf %305, %306 : vector<8x1xf32>
    %308 = arith.mulf %302, %302 : vector<8x1xf32>
    %309 = arith.subf %307, %308 : vector<8x1xf32>
    %cst_146 = arith.constant 0.000000e+00 : f32
    %310 = vector.broadcast %cst_146 : f32 to vector<8x1xf32>
    %311 = arith.maximumf %309, %310 : vector<8x1xf32>
    %312 = vector.broadcast %302 : vector<8x1xf32> to vector<8x32xf32>
    %313 = arith.subf %294, %312 : vector<8x32xf32>
    %cst_147 = arith.constant 9.99999974E-6 : f32
    %314 = vector.broadcast %cst_147 : f32 to vector<8x1xf32>
    %315 = arith.addf %311, %314 : vector<8x1xf32>
    %316 = math.rsqrt %315 : vector<8x1xf32>
    %317 = vector.broadcast %316 : vector<8x1xf32> to vector<8x32xf32>
    %318 = arith.mulf %313, %317 : vector<8x32xf32>
    %319 = vector.broadcast %296 : vector<1x32xf32> to vector<8x32xf32>
    %320 = arith.mulf %318, %319 : vector<8x32xf32>
    %321 = vector.broadcast %298 : vector<1x32xf32> to vector<8x32xf32>
    %322 = arith.addf %320, %321 : vector<8x32xf32>
    %323 = arith.truncf %322 : vector<8x32xf32> to vector<8x32xbf16>
    %c1_148 = arith.constant 1 : index
    %c0_149 = arith.constant 0 : index
    %c0_150 = arith.constant 0 : index
    %324 = vector.load %arg8[%c1_148, %c0_149, %c0_150] : memref<2x32x128xbf16, #tpu.memory_space<vmem>>, vector<1x32x128xbf16>
    %325 = vector.shape_cast %324 : vector<1x32x128xbf16> to vector<32x128xbf16>
    %cst_151 = arith.constant dense<0.000000e+00> : vector<8x128xf32>
    %326 = tpu.matmul %323, %325, %cst_151 {dimension_numbers = #tpu.dot_dimension_numbers<[1], [0], [0], [1], [0, 0, 1, 1], [], []>} : vector<8x32xbf16>, vector<32x128xbf16>, vector<8x128xf32> -> vector<8x128xf32>
    %c1_152 = arith.constant 1 : index
    %c0_153 = arith.constant 0 : index
    %c0_154 = arith.constant 0 : index
    %327 = vector.load %arg9[%c1_152, %c0_153, %c0_154] : memref<2x1x128xf32, #tpu.memory_space<vmem>>, vector<1x1x128xf32>
    %328 = vector.shape_cast %327 : vector<1x1x128xf32> to vector<1x128xf32>
    %329 = vector.broadcast %328 : vector<1x128xf32> to vector<8x128xf32>
    %330 = arith.addf %326, %329 : vector<8x128xf32>
    %cst_155 = arith.constant 0.000000e+00 : f32
    %331 = vector.broadcast %cst_155 : f32 to vector<8x128xf32>
    %332 = arith.maximumf %330, %331 : vector<8x128xf32>
    %333 = arith.truncf %332 : vector<8x128xf32> to vector<8x128xbf16>
    %c1_156 = arith.constant 1 : index
    %c0_157 = arith.constant 0 : index
    %c0_158 = arith.constant 0 : index
    %334 = vector.load %arg10[%c1_156, %c0_157, %c0_158] : memref<2x128x32xbf16, #tpu.memory_space<vmem>>, vector<1x128x32xbf16>
    %335 = vector.shape_cast %334 : vector<1x128x32xbf16> to vector<128x32xbf16>
    %cst_159 = arith.constant dense<0.000000e+00> : vector<8x32xf32>
    %336 = tpu.matmul %333, %335, %cst_159 {dimension_numbers = #tpu.dot_dimension_numbers<[1], [0], [0], [1], [0, 0, 1, 1], [], []>} : vector<8x128xbf16>, vector<128x32xbf16>, vector<8x32xf32> -> vector<8x32xf32>
    %c1_160 = arith.constant 1 : index
    %c0_161 = arith.constant 0 : index
    %c0_162 = arith.constant 0 : index
    %337 = vector.load %arg11[%c1_160, %c0_161, %c0_162] : memref<2x1x32xf32, #tpu.memory_space<vmem>>, vector<1x1x32xf32>
    %338 = vector.shape_cast %337 : vector<1x1x32xf32> to vector<1x32xf32>
    %339 = vector.broadcast %338 : vector<1x32xf32> to vector<8x32xf32>
    %340 = arith.addf %336, %339 : vector<8x32xf32>
    %341 = arith.addf %340, %322 : vector<8x32xf32>
    %c1_163 = arith.constant 1 : index
    %c0_164 = arith.constant 0 : index
    %c0_165 = arith.constant 0 : index
    %342 = vector.load %arg16[%c1_163, %c0_164, %c0_165] : memref<2x1x32xf32, #tpu.memory_space<vmem>>, vector<1x1x32xf32>
    %343 = vector.shape_cast %342 : vector<1x1x32xf32> to vector<1x32xf32>
    %c1_166 = arith.constant 1 : index
    %c0_167 = arith.constant 0 : index
    %c0_168 = arith.constant 0 : index
    %344 = vector.load %arg17[%c1_166, %c0_167, %c0_168] : memref<2x1x32xf32, #tpu.memory_space<vmem>>, vector<1x1x32xf32>
    %345 = vector.shape_cast %344 : vector<1x1x32xf32> to vector<1x32xf32>
    %cst_169 = arith.constant dense<0.000000e+00> : vector<8xf32>
    %346 = vector.multi_reduction <add>, %341, %cst_169 [1] : vector<8x32xf32> to vector<8xf32>
    %347 = vector.shape_cast %346 : vector<8xf32> to vector<8x1xf32>
    %cst_170 = arith.constant 3.200000e+01 : f32
    %348 = vector.broadcast %cst_170 : f32 to vector<8x1xf32>
    %349 = arith.divf %347, %348 : vector<8x1xf32>
    %350 = arith.mulf %341, %341 : vector<8x32xf32>
    %cst_171 = arith.constant dense<0.000000e+00> : vector<8xf32>
    %351 = vector.multi_reduction <add>, %350, %cst_171 [1] : vector<8x32xf32> to vector<8xf32>
    %352 = vector.shape_cast %351 : vector<8xf32> to vector<8x1xf32>
    %cst_172 = arith.constant 3.200000e+01 : f32
    %353 = vector.broadcast %cst_172 : f32 to vector<8x1xf32>
    %354 = arith.divf %352, %353 : vector<8x1xf32>
    %355 = arith.mulf %349, %349 : vector<8x1xf32>
    %356 = arith.subf %354, %355 : vector<8x1xf32>
    %cst_173 = arith.constant 0.000000e+00 : f32
    %357 = vector.broadcast %cst_173 : f32 to vector<8x1xf32>
    %358 = arith.maximumf %356, %357 : vector<8x1xf32>
    %359 = vector.broadcast %349 : vector<8x1xf32> to vector<8x32xf32>
    %360 = arith.subf %341, %359 : vector<8x32xf32>
    %cst_174 = arith.constant 9.99999974E-6 : f32
    %361 = vector.broadcast %cst_174 : f32 to vector<8x1xf32>
    %362 = arith.addf %358, %361 : vector<8x1xf32>
    %363 = math.rsqrt %362 : vector<8x1xf32>
    %364 = vector.broadcast %363 : vector<8x1xf32> to vector<8x32xf32>
    %365 = arith.mulf %360, %364 : vector<8x32xf32>
    %366 = vector.broadcast %343 : vector<1x32xf32> to vector<8x32xf32>
    %367 = arith.mulf %365, %366 : vector<8x32xf32>
    %368 = vector.broadcast %345 : vector<1x32xf32> to vector<8x32xf32>
    %369 = arith.addf %367, %368 : vector<8x32xf32>
    %c0_175 = arith.constant 0 : index
    %c0_176 = arith.constant 0 : index
    %370 = vector.load %arg18[%c0_175, %c0_176] : memref<1x32xf32, #tpu.memory_space<vmem>>, vector<1x32xf32>
    %c0_177 = arith.constant 0 : index
    %c0_178 = arith.constant 0 : index
    %371 = vector.load %arg19[%c0_177, %c0_178] : memref<1x32xf32, #tpu.memory_space<vmem>>, vector<1x32xf32>
    %cst_179 = arith.constant dense<0.000000e+00> : vector<8xf32>
    %372 = vector.multi_reduction <add>, %369, %cst_179 [1] : vector<8x32xf32> to vector<8xf32>
    %373 = vector.shape_cast %372 : vector<8xf32> to vector<8x1xf32>
    %cst_180 = arith.constant 3.200000e+01 : f32
    %374 = vector.broadcast %cst_180 : f32 to vector<8x1xf32>
    %375 = arith.divf %373, %374 : vector<8x1xf32>
    %376 = arith.mulf %369, %369 : vector<8x32xf32>
    %cst_181 = arith.constant dense<0.000000e+00> : vector<8xf32>
    %377 = vector.multi_reduction <add>, %376, %cst_181 [1] : vector<8x32xf32> to vector<8xf32>
    %378 = vector.shape_cast %377 : vector<8xf32> to vector<8x1xf32>
    %cst_182 = arith.constant 3.200000e+01 : f32
    %379 = vector.broadcast %cst_182 : f32 to vector<8x1xf32>
    %380 = arith.divf %378, %379 : vector<8x1xf32>
    %381 = arith.mulf %375, %375 : vector<8x1xf32>
    %382 = arith.subf %380, %381 : vector<8x1xf32>
    %cst_183 = arith.constant 0.000000e+00 : f32
    %383 = vector.broadcast %cst_183 : f32 to vector<8x1xf32>
    %384 = arith.maximumf %382, %383 : vector<8x1xf32>
    %385 = vector.broadcast %375 : vector<8x1xf32> to vector<8x32xf32>
    %386 = arith.subf %369, %385 : vector<8x32xf32>
    %cst_184 = arith.constant 9.99999974E-6 : f32
    %387 = vector.broadcast %cst_184 : f32 to vector<8x1xf32>
    %388 = arith.addf %384, %387 : vector<8x1xf32>
    %389 = math.rsqrt %388 : vector<8x1xf32>
    %390 = vector.broadcast %389 : vector<8x1xf32> to vector<8x32xf32>
    %391 = arith.mulf %386, %390 : vector<8x32xf32>
    %392 = vector.broadcast %370 : vector<1x32xf32> to vector<8x32xf32>
    %393 = arith.mulf %391, %392 : vector<8x32xf32>
    %394 = vector.broadcast %371 : vector<1x32xf32> to vector<8x32xf32>
    %395 = arith.addf %393, %394 : vector<8x32xf32>
    %c0_185 = arith.constant 0 : index
    %c0_186 = arith.constant 0 : index
    %c0_187 = arith.constant 0 : index
    %396 = vector.load %arg20[%c0_185, %c0_186, %c0_187] : memref<1x8x32xf32, #tpu.memory_space<vmem>>, vector<1x8x32xf32>
    %397 = vector.shape_cast %396 : vector<1x8x32xf32> to vector<8x32xf32>
    %398 = vector.shape_cast %395 : vector<8x32xf32> to vector<1x8x32xf32>
    tpu.vector_store %arg20[%c0_185, %c0_186, %c0_187], %398 {strides = array<i32>} : memref<1x8x32xf32, #tpu.memory_space<vmem>>, vector<1x8x32xf32>,
    return
  }
  func.func @transform_0(%arg0: i32) -> (i32, i32, i32) {
    %c0_i32 = arith.constant 0 : i32
    %c0_i32_0 = arith.constant 0 : i32
    %c0_i32_1 = arith.constant 0 : i32
    return %arg0, %c0_i32, %c0_i32_0 : i32, i32, i32
  }
  func.func @transform_1(%arg0: i32) -> (i32, i32, i32) {
    %c0_i32 = arith.constant 0 : i32
    %c0_i32_0 = arith.constant 0 : i32
    %c0_i32_1 = arith.constant 0 : i32
    return %arg0, %c0_i32, %c0_i32_0 : i32, i32, i32
  }
  func.func @transform_2(%arg0: i32) -> (i32, i32) {
    %c0_i32 = arith.constant 0 : i32
    %c0_i32_0 = arith.constant 0 : i32
    %c0_i32_1 = arith.constant 0 : i32
    return %c0_i32, %c0_i32_0 : i32, i32
  }
  func.func @transform_3(%arg0: i32) -> (i32, i32) {
    %c0_i32 = arith.constant 0 : i32
    %c0_i32_0 = arith.constant 0 : i32
    %c0_i32_1 = arith.constant 0 : i32
    return %c0_i32, %c0_i32_0 : i32, i32
  }
  func.func @transform_4(%arg0: i32) -> (i32, i32, i32) {
    %c0_i32 = arith.constant 0 : i32
    %c0_i32_0 = arith.constant 0 : i32
    %c0_i32_1 = arith.constant 0 : i32
    %c0_i32_2 = arith.constant 0 : i32
    return %c0_i32, %c0_i32_0, %c0_i32_1 : i32, i32, i32
  }
  func.func @transform_5(%arg0: i32) -> (i32, i32, i32) {
    %c0_i32 = arith.constant 0 : i32
    %c0_i32_0 = arith.constant 0 : i32
    %c0_i32_1 = arith.constant 0 : i32
    %c0_i32_2 = arith.constant 0 : i32
    return %c0_i32, %c0_i32_0, %c0_i32_1 : i32, i32, i32
  }
  func.func @transform_6(%arg0: i32) -> (i32, i32, i32) {
    %c0_i32 = arith.constant 0 : i32
    %c0_i32_0 = arith.constant 0 : i32
    %c0_i32_1 = arith.constant 0 : i32
    %c0_i32_2 = arith.constant 0 : i32
    return %c0_i32, %c0_i32_0, %c0_i32_1 : i32, i32, i32
  }
  func.func @transform_7(%arg0: i32) -> (i32, i32, i32) {
    %c0_i32 = arith.constant 0 : i32
    %c0_i32_0 = arith.constant 0 : i32
    %c0_i32_1 = arith.constant 0 : i32
    %c0_i32_2 = arith.constant 0 : i32
    return %c0_i32, %c0_i32_0, %c0_i32_1 : i32, i32, i32
  }
  func.func @transform_8(%arg0: i32) -> (i32, i32, i32) {
    %c0_i32 = arith.constant 0 : i32
    %c0_i32_0 = arith.constant 0 : i32
    %c0_i32_1 = arith.constant 0 : i32
    %c0_i32_2 = arith.constant 0 : i32
    return %c0_i32, %c0_i32_0, %c0_i32_1 : i32, i32, i32
  }
  func.func @transform_9(%arg0: i32) -> (i32, i32, i32) {
    %c0_i32 = arith.constant 0 : i32
    %c0_i32_0 = arith.constant 0 : i32
    %c0_i32_1 = arith.constant 0 : i32
    %c0_i32_2 = arith.constant 0 : i32
    return %c0_i32, %c0_i32_0, %c0_i32_1 : i32, i32, i32
  }
  func.func @transform_10(%arg0: i32) -> (i32, i32, i32) {
    %c0_i32 = arith.constant 0 : i32
    %c0_i32_0 = arith.constant 0 : i32
    %c0_i32_1 = arith.constant 0 : i32
    %c0_i32_2 = arith.constant 0 : i32
    return %c0_i32, %c0_i32_0, %c0_i32_1 : i32, i32, i32
  }
  func.func @transform_11(%arg0: i32) -> (i32, i32, i32) {
    %c0_i32 = arith.constant 0 : i32
    %c0_i32_0 = arith.constant 0 : i32
    %c0_i32_1 = arith.constant 0 : i32
    %c0_i32_2 = arith.constant 0 : i32
    return %c0_i32, %c0_i32_0, %c0_i32_1 : i32, i32, i32
  }
  func.func @transform_12(%arg0: i32) -> (i32, i32, i32) {
    %c0_i32 = arith.constant 0 : i32
    %c0_i32_0 = arith.constant 0 : i32
    %c0_i32_1 = arith.constant 0 : i32
    %c0_i32_2 = arith.constant 0 : i32
    return %c0_i32, %c0_i32_0, %c0_i32_1 : i32, i32, i32
  }
  func.func @transform_13(%arg0: i32) -> (i32, i32, i32) {
    %c0_i32 = arith.constant 0 : i32
    %c0_i32_0 = arith.constant 0 : i32
    %c0_i32_1 = arith.constant 0 : i32
    %c0_i32_2 = arith.constant 0 : i32
    return %c0_i32, %c0_i32_0, %c0_i32_1 : i32, i32, i32
  }
  func.func @transform_14(%arg0: i32) -> (i32, i32, i32) {
    %c0_i32 = arith.constant 0 : i32
    %c0_i32_0 = arith.constant 0 : i32
    %c0_i32_1 = arith.constant 0 : i32
    %c0_i32_2 = arith.constant 0 : i32
    return %c0_i32, %c0_i32_0, %c0_i32_1 : i32, i32, i32
  }
  func.func @transform_15(%arg0: i32) -> (i32, i32, i32) {
    %c0_i32 = arith.constant 0 : i32
    %c0_i32_0 = arith.constant 0 : i32
    %c0_i32_1 = arith.constant 0 : i32
    %c0_i32_2 = arith.constant 0 : i32
    return %c0_i32, %c0_i32_0, %c0_i32_1 : i32, i32, i32
  }
  func.func @transform_16(%arg0: i32) -> (i32, i32, i32) {
    %c0_i32 = arith.constant 0 : i32
    %c0_i32_0 = arith.constant 0 : i32
    %c0_i32_1 = arith.constant 0 : i32
    %c0_i32_2 = arith.constant 0 : i32
    return %c0_i32, %c0_i32_0, %c0_i32_1 : i32, i32, i32
  }
  func.func @transform_17(%arg0: i32) -> (i32, i32) {
    %c0_i32 = arith.constant 0 : i32
    %c0_i32_0 = arith.constant 0 : i32
    %c0_i32_1 = arith.constant 0 : i32
    return %c0_i32, %c0_i32_0 : i32, i32
  }
  func.func @transform_18(%arg0: i32) -> (i32, i32) {
    %c0_i32 = arith.constant 0 : i32
    %c0_i32_0 = arith.constant 0 : i32
    %c0_i32_1 = arith.constant 0 : i32
    return %c0_i32, %c0_i32_0 : i32, i32
  }
  func.func @transform_19(%arg0: i32) -> (i32, i32, i32) {
    %c0_i32 = arith.constant 0 : i32
    %c0_i32_0 = arith.constant 0 : i32
    %c0_i32_1 = arith.constant 0 : i32
    return %arg0, %c0_i32, %c0_i32_0 : i32, i32, i32
  }
}

</mosaic_0001>

<bundles_post_ra>
// kernel: tpu_custom_call.1
= control target key start
LH: loop header
LB: loop body
LE: loop exit
PB: predicated region body
PF: predicated region fallthrough
CT: control target
= control target key end

     0   :  { %s3233_s0 = inlined_call_operand.vmem [shape: f32[2,8,32], index: 0, kind: input, shape index: {}]   ;;  %s3234_s1 = inlined_call_operand.vmem [shape: f32[2,8,32], index: 1, kind: input, shape index: {}]   ;;  %s3235_s2 = inlined_call_operand.vmem [shape: f32[8,32], index: 2, kind: input, shape index: {}]   ;;  %s3236_s3 = inlined_call_operand.vmem [shape: f32[8,32], index: 3, kind: input, shape index: {}]   ;;  %s3237_s4 = inlined_call_operand.vmem [shape: bf16[2,32,64], index: 4, kind: input, shape index: {}]   ;;  %s3238_s5 = inlined_call_operand.vmem [shape: bf16[2,32,128], index: 5, kind: input, shape index: {}]   ;;  %s3239_s6 = inlined_call_operand.vmem [shape: bf16[2,64,32], index: 6, kind: input, shape index: {}]   ;;  %s3240_s7 = inlined_call_operand.vmem [shape: bf16[2,32,128], index: 7, kind: input, shape index: {}]   ;;  %s3241_s8 = inlined_call_operand.vmem [shape: f32[2,1,128], index: 8, kind: input, shape index: {}]   ;;  %s3242_s9 = inlined_call_operand.vmem [shape: bf16[2,128,32], index: 9, kind: input, shape index: {}]   ;;  %s3243_s10 = inlined_call_operand.vmem [shape: f32[2,1,32], index: 10, kind: input, shape index: {}]   ;;  %s3244_s11 = inlined_call_operand.vmem [shape: f32[2,1,32], index: 11, kind: input, shape index: {}]   ;;  %s3245_s12 = inlined_call_operand.vmem [shape: f32[2,1,32], index: 12, kind: input, shape index: {}]   ;;  %s3246_s13 = inlined_call_operand.vmem [shape: f32[2,1,32], index: 13, kind: input, shape index: {}]   ;;  %s3247_s14 = inlined_call_operand.vmem [shape: f32[2,1,32], index: 14, kind: input, shape index: {}]   ;;  %s3248_s15 = inlined_call_operand.vmem [shape: f32[2,1,32], index: 15, kind: input, shape index: {}]   ;;  %s3249_s16 = inlined_call_operand.vmem [shape: f32[2,1,32], index: 16, kind: input, shape index: {}]   ;;  %s3250_s17 = inlined_call_operand.vmem [shape: f32[1,32], index: 17, kind: input, shape index: {}]   ;;  %s3251_s18 = inlined_call_operand.vmem [shape: f32[1,32], index: 18, kind: input, shape index: {}]   ;;  %s3252_s19 = inlined_call_operand.hbm [shape: f32[2,8,32], index: 19, kind: output, shape index: {}]  }
   0x1   :  { %3262 = sst [smem:[#allocation12_spill]] %s3233_s0 }
   0x2   :  { %3263 = sst [smem:[#allocation13_spill]] %s3234_s1 }
   0x3   :  { %3264 = sst [smem:[#allocation14_spill]] %s3235_s2 }
   0x4   :  { %3265 = sst [smem:[#allocation15_spill]] %s3236_s3 }
   0x5   :  { %3266 = sst [smem:[#allocation16_spill]] %s3237_s4 }
   0x6   :  { %3267 = sst [smem:[#allocation17_spill]] %s3250_s17 }
   0x7   :  { %3268 = sst [smem:[#allocation18_spill]] %s3251_s18 }
   0x8   :  { %3269 = sst [smem:[#allocation19_spill]] %s3252_s19 }
   0x9   :  { %24 = vsyncpa [#allocation3], 0 }
   0xa   :  { %26 = vsyncpa [#allocation3 + $0x1], 0  ;;  %s2807_s0 = smov 0   ;;  %s2809_s30 = smov 0  }
   0xb   :  { %s2811_s20 = smov 0   ;;  %s2813_s21 = smov 0  }
   0xc LB: > { %3270 = sst [smem:[#allocation5_spill]] %s2687_s0  ;;  %s2828_s1 = sadd.s32 4294967295, %s2699_s21   ;;  %s2699_s21 = sphi %s2813_s21, %s3292_s21   ;;  %s2695_s20 = sphi %s2811_s20, %s3294_s20   ;;  %s2691_s30 = sphi %s2809_s30, %s3296_s30   ;;  %s2687_s0 = sphi %s2807_s0, %s3295_s0  }
   0xd   : > { %3271 = sst [smem:[#allocation6_spill]] %s2695_s20  ;;  %s2178_s22 = sadd.s32 4294967294, %s2699_s21  }
   0xe   : > { %3272 = sst [smem:[#allocation7_spill]] %s2699_s21  ;;  %s2832_s2 = sadd.s32 1, %s2699_s21  }
   0xf   : > { %3273 = sst [smem:[#allocation8_spill]] %s2832_s2  ;;  %s448_s23 = sadd.s32 1, %s2695_s20 }
  0x10   : > { %s445_s24 = ssub.s32 %s2699_s21, %s2832_s2  ;;  %p458_p0 = scmp.ne.s32.totalorder %s2695_s20, %s2691_s30 }
  0x11   : > { %p446_p1 = scmp.eq.s32.totalorder %s445_s24, 0  ;;  %p459_p2 = scmp.eq.s32.totalorder %s2828_s1, 1 }
  0x12   : > { %p464_p3 = scmp.ne.s32.totalorder %s2691_s30, %s2687_s0  ;;  %p465_p4 = scmp.eq.s32.totalorder %s2178_s22, 1 }
  0x13   : > { %s2843_s25 = scalar_select %p446_p1, %s2695_s20, %s448_s23  }
  0x14   : > { %p2845_p5 = por %p459_p2, %p458_p0  ;;  %p2849_p6 = por %p465_p4, %p464_p3 }
  0x15   : > { %3274 = sst [smem:[#allocation9_spill]] %s2843_s25  ;;  %p2181_p7 = scmp.ge.s32.totalorder %s2699_s21, 1 }
  0x16   : > { %s3275_s3 = scalar_select %p2845_p5, 1, 0 }
  0x17   : > { %s3277_s26 = scalar_select %p2849_p6, 1, 0 }
  0x18   : > { %3276 = sst [smem:[#allocation10_spill]] %s3275_s3  ;;  %p548_p8 = scmp.lt.s32.totalorder %s2699_s21, 3 }
  0x19   : > { %3278 = sst [smem:[#allocation11_spill]] %s3277_s26 }
  0x1a   : > { %p549_p9 = pnand %p2181_p7, %p548_p8 }
  0x1b   : > { %p607_p10 = scmp.lt.s32.totalorder (!%p549_p9), %s2828_s1, 1  ;;  %s3279_s23 = sld [smem:[#allocation15_spill]] (!%p549_p9)  ;;  %vm626_vm0 = vcmask (!%p549_p9), 261120   ;;  %v2570_v15 = vld [vmem:[%s3238_s5] sm:$0xff] (!%p549_p9)   ;;  %v2701_v16 = vmov (!%p549_p9), 0.0   ;;  %v2572_v18 = vld [vmem:[%s3238_s5 + $0x8] sm:$0xff] (!%p549_p9)  }
  0x1c   : > { %552 = sbr.rel (%p549_p9) target bundleno = 4954 (0x135a), region = 96  ;;  %s3280_s20 = sld [smem:[#allocation14_spill]] (!%p549_p9)  ;;  %2365 = vmatprep.subr.bf16.mxu0 (!%p549_p9), %v2701_v16  ;;  %2373 = vmatprep.subr.bf16.mxu1 (!%p549_p9), %v2701_v16  ;;  %vm2702_vm1 = vmmov (!%p549_p9), 0   ;;  %v2185_v38 = vld [vmem:[%s3244_s11] ss:$0 sm:$0xff] (!%p549_p9)  ;;  %vm844_vm2 = vcmask (!%p549_p9), 64512  }
  0x1d   : > { %s3281_s26 = sld [smem:[#allocation13_spill]] (!%p549_p9)  ;;  %s3282_s17 = sld [smem:[#allocation12_spill]] (!%p549_p9)  ;;  %2374 = vmatpush3.bf16.msra.mxu1 (!%p549_p9), %v2570_v15  ;;  %2369 = vmatprep.mubr.msk.bf16.mxu0 (!%p549_p9), %vm2702_vm1, %v2701_v16  ;;  %v2186_v41 = vld [vmem:[%s3245_s12] ss:$0 sm:$0xff] (!%p549_p9)  ;;  %vm863_vm3 = vcmask (!%p549_p9), 1043456   ;;  %vm1056_vm4 = vcmask (!%p549_p9), 523264  }
  0x1e   : > { %s3283_s4 = sld [smem:[#allocation16_spill]] (!%p549_p9)  ;;  %2375 = vmatprep.subr.bf16.mxu1 (!%p549_p9), %v2701_v16  ;;  %2377 = vmatprep.mubr.msk.bf16.mxu1 (!%p549_p9), %vm2702_vm1, %v2701_v16  ;;  %s2703_s29 = smov (!%p549_p9), 96  }
  0x1f   : > { %s2704_s22 = smov (!%p549_p9), 64   ;;  %s3287_s0 = sld [smem:[#allocation19_spill]] (!%p549_p9) }
  0x21   : > { %v622_v0 = vld [vmem:[%s3279_s23] sm:$0xff] (!%p549_p9)  ;;  %2376 = vmatpush3.bf16.msra.mxu1 (!%p549_p9), %v2572_v18  ;;  %s2705_s23 = smov (!%p549_p9), 32  }
  0x22   : > { %v618_v1 = vld [vmem:[%s3280_s20] sm:$0xff] (!%p549_p9)  ;;  %2387 = vmatprep.subr.bf16.mxu1 (!%p549_p9), %v2701_v16 }
  0x23   : > { %s608_s27 = scalar_select %p607_p10, %s2828_s1, 1 }
  0x24   : > { %v2569_v14 = vld [vmem:[%s3283_s4] sm:$0xff]   ;;  %v2571_v17 = vld [vmem:[%s3283_s4 + $0x8] sm:$0xff]  }
  0x25   : > { %s2183_s28 = sshll.u32 %s608_s27, 3  ;;  %2366 = vmatpush3.bf16.msra.mxu0 %v2569_v14 }
  0x26   : > { %s614_s19 = scalar_lea.vmem %s3281_s26, %s2183_s28  ;;  %s610_s3 = scalar_lea.vmem %s3282_s17, %s2183_s28  ;;  %2367 = vmatprep.subr.bf16.mxu0 %v2701_v16 }
  0x27   : > { %v620_v2 = vld [vmem:[%s614_s19] sm:$0xff]  ;;  %s3285_s26 = sld [smem:[#allocation17_spill]] }
  0x28   : > { %v616_v3 = vld [vmem:[%s610_s3] sm:$0xff]  ;;  %v621_v4 = vmul.f32 5.656854, %v620_v2 }
  0x29   : > { %v617_v5 = vmul.f32 5.656854, %v616_v3  ;;  %2368 = vmatpush3.bf16.msra.mxu0 %v2571_v17 }
  0x2a   : > { %v623_v6 = vadd.f32 %v622_v0, %v621_v4  ;;  %2381 = vmatprep.subr.bf16.mxu0 %v2701_v16 }
  0x2b   : > { %v619_v7 = vadd.f32 %v618_v1, %v617_v5 }
  0x2c   : > { %v658_v8 = vsel %vm626_vm0, %v623_v6, 0.0  ;;  %v662_v10 = vmul.f32 %v623_v6, %v623_v6 }
  0x2d   : > { %v627_v9 = vsel %vm626_vm0, %v619_v7, 0.0  ;;  %v632_v11 = vmul.f32 %v619_v7, %v619_v7  ;;  %659 = vadd.xlane.f32.xlu0 %v658_v8 }
  0x2e   : > { %628 = vadd.xlane.f32.xlu1 %v627_v9  ;;  %v663_v12 = vsel %vm626_vm0, %v662_v10, 0.0 }
  0x2f   : > { %v633_v13 = vsel %vm626_vm0, %v632_v11, 0.0 }
  0x31   : > { %664 = vadd.xlane.f32.xlu0 %v663_v12 }
  0x32   : > { %634 = vadd.xlane.f32.xlu1 %v633_v13 }
  0xba   : > { %v660_v19 = vpop.xlane.xlu0 %659 }
  0xbb   : > { %v629_v20 = vpop.xlane.xlu1 %628  ;;  %v661_v21 = vmul.f32 0.03125, %v660_v19 }
  0xbc   : > { %v631_v22 = vmul.f32 0.03125, %v629_v20 }
  0xbd   : > { %v667_v26 = vmul.f32 %v661_v21, %v661_v21  ;;  %v670_v35 = vsub.f32 %v623_v6, %v661_v21 }
  0xbe   : > { %v637_v23 = vmul.f32 %v631_v22, %v631_v22  ;;  %v665_v24 = vpop.xlane.xlu0 %664  ;;  %v640_v37 = vsub.f32 %v619_v7, %v631_v22 }
  0xbf   : > { %v635_v25 = vpop.xlane.xlu1 %634  ;;  %v666_v27 = vmul.f32 0.03125, %v665_v24 }
  0xc0   : > { %v636_v28 = vmul.f32 0.03125, %v635_v25 }
  0xc1   : > { %v668_v29 = vsub.f32 %v666_v27, %v667_v26 }
  0xc2   : > { %v638_v30 = vsub.f32 %v636_v28, %v637_v23 }
  0xc3   : > { %v669_v31 = vmax.f32 %v668_v29, 0.0 }
  0xc4   : > { %v639_v32 = vmax.f32 %v638_v30, 0.0 }
  0xc5   : > { %v671_v33 = vadd.f32 1e-05, %v669_v31 }
  0xc6   : > { %v641_v34 = vadd.f32 1e-05, %v639_v32  ;;  %v2573_v32 = vld [vmem:[%s3239_s6] sm:$0xff]  }
  0xc7   : > { %2605 = vrsqrt.f32 %v671_v33  ;;  %v2574_v33 = vld [vmem:[%s3239_s6 + $0x8] sm:$0xff]  }
  0xc8   : > { %2607 = vrsqrt.f32 %v641_v34  ;;  %v2575_v34 = vld [vmem:[%s3239_s6 + $0x10] sm:$0xff]  }
  0xd1   : > { %v2606_v36 = vpop.eup %2605 }
  0xd2   : > { %v2608_v39 = vpop.eup %2607  ;;  %v2898_v40 = vmul.f32 %v2606_v36, %v670_v35 }
  0xd3   : > { %v643_v42 = vmul.f32 %v2608_v39, %v640_v37  ;;  %v2576_v39 = vld [vmem:[%s3239_s6 + $0x18] sm:$0xff]  }
  0xd4   : > { %v674_v43 = vmul.f32 %v2185_v38, %v2898_v40 }
  0xd5   : > { %v650_v44 = vmul.f32 %v2185_v38, %v643_v42 }
  0xd6   : > { %v675_v45 = vadd.f32 %v2186_v41, %v674_v43 }
  0xd7   : > { %v2904_v46 = vadd.f32 %v2186_v41, %v650_v44 }
  0xd8   : > { %v677_v47 = vpack.c.bf16 %v675_v45, %v675_v45 }
  0xd9   : > { %v676_v48 = vpack.c.bf16 %v2904_v46, %v2904_v46 }
  0xda   : > { %2378 = vmatmul.mubr.msk.bf16.vlgmr.msra.gmra.mrb[0].mxu1 %vm626_vm0, %v677_v47 }
  0xdb   : > { %2370 = vmatmul.mubr.msk.bf16.vlgmr.msra.gmra.mrb[0].mxu0 %vm626_vm0, %v676_v48  ;;  %2389 = vmatprep.mubr.msk.bf16.mxu1 %vm2702_vm1, %v2701_v16 }
  0xdc   : > { %2383 = vmatprep.mubr.msk.bf16.mxu0 %vm2702_vm1, %v2701_v16 }
 0x1ad   : > { %v790_v49 = vpop.f32.mrb[0].mxu1 }
 0x1ae   : > { %v731_v50 = vpop.f32.mrb[0].mxu0  ;;  %v797_v51 = vpack.c.bf16 %v790_v49, %v790_v49  ;;  %v2379_v52 = vpop.f32.mrb[1].mxu1 }
 0x1af   : > { %v796_v53 = vpack.c.bf16 %v731_v50, %v731_v50  ;;  %v2371_v54 = vpop.f32.mrb[1].mxu0  ;;  %v793_v55 = vpop.f32.mrb[2].mxu1 }
 0x1b0   : > { %v734_v56 = vpop.f32.mrb[2].mxu0  ;;  %910 = vrot.lane.b32.xlu0 %v797_v51, %s2703_s29  ;;  %v2380_v57 = vpop.f32.mrb[3].mxu1  ;;  %v802_v58 = vsel %vm626_vm0, %v797_v51, 0 }
 0x1b1   : > { %908 = vrot.lane.b32.xlu1 %v796_v53, %s2703_s29  ;;  %v2372_v59 = vpop.f32.mrb[3].mxu0  ;;  %2382 = vmatpush3.bf16.xpose.msra.mxu0 %v802_v58  ;;  %v2577_v57 = vld [vmem:[%s3240_s7] sm:$0xff]   ;;  %v2578_v58 = vld [vmem:[%s3240_s7 + $0x8] sm:$0xff]  }
 0x1b2   : > { %2393 = vmatprep.subr.bf16.mxu0 %v2701_v16 }
 0x1b8   : > { %2384 = vmatmul.mubr.msk.bf16.vlgmr.msra.gmra.mrb[4].mxu0 %vm626_vm0, %v796_v53 }
 0x1b9   : > { %2395 = vmatprep.mubr.msk.bf16.mxu0 %vm2702_vm1, %v2701_v16 }
 0x222   : > { %v911_v60 = vpop.permute.xlu0 %910 }
 0x223   : > { %v916_v61 = vsel %vm626_vm0, %v911_v60, 0  ;;  %v909_v62 = vpop.permute.xlu1 %908 }
 0x224   : > { %2394 = vmatpush3.bf16.xpose.msra.mxu0 %v916_v61 }
 0x225   : > { %2445 = vmatprep.subr.bf16.mxu0 %v2701_v16 }
 0x22b   : > { %2396 = vmatmul.mubr.msk.bf16.vlgmr.msra.gmra.mrb[8].mxu0 %vm626_vm0, %v909_v62 }
 0x22c   : > { %2449 = vmatprep.mubr.msk.bf16.mxu0 %vm2702_vm1, %v2701_v16 }
 0x28b   : > { %v838_v63 = vpop.f32.mrb[4].mxu0 }
 0x28c   : > { %v2385_v0 = vpop.f32.mrb[5].mxu0  ;;  %v845_v1 = vsel %vm844_vm2, %v838_v63, -inf }
 0x28d   : > { %846 = vmax.xlane.f32.xlu1 %v845_v1  ;;  %v841_v2 = vpop.f32.mrb[6].mxu0 }
 0x28e   : > { %v2386_v3 = vpop.f32.mrb[7].mxu0 }
 0x2fe   : > { %v952_v4 = vpop.f32.mrb[8].mxu0 }
 0x2ff   : > { %v2397_v5 = vpop.f32.mrb[9].mxu0  ;;  %v958_v6 = vsel %vm844_vm2, %v952_v4, -inf }
 0x300   : > { %959 = vmax.xlane.f32.xlu0 %v958_v6  ;;  %v955_v7 = vpop.f32.mrb[10].mxu0  ;;  %v2203_v6 = vld [vmem:[%s3247_s14] ss:$0 sm:$0xff] }
 0x301   : > { %v2398_v8 = vpop.f32.mrb[11].mxu0 }
 0x31a   : > { %v847_v9 = vpop.xlane.xlu1 %846 }
 0x31b   : > { %v848_v10 = vsub.f32 %v838_v63, %v847_v9  ;;  %v2579_v9 = vld [vmem:[%s3242_s9] sm:$0xff]  }
 0x31d   : > { %v849_v11 = vmul.f32 1.442695, %v848_v10 }
 0x31f   : > { %2609 = vpow2.f32 %v849_v11  ;;  %v2580_v11 = vld [vmem:[%s3242_s9 + $0x8] sm:$0xff]  }
 0x329   : > { %v2610_v12 = vpop.eup %2609 }
 0x32a   : > { %v851_v13 = vsel %vm844_vm2, %v2610_v12, 0.0 }
 0x32b   : > { %852 = vadd.xlane.f32.xlu0 %v851_v13  ;;  %v2582_v13 = vld [vmem:[%s3242_s9 + $0x18] sm:$0xff]  }
 0x341   : > { %858 = vrot.lane.b32.xlu0 %v797_v51, %s2704_s22 }
 0x38d   : > { %v960_v14 = vpop.xlane.xlu0 %959 }
 0x38e   : > { %v961_v15 = vsub.f32 %v952_v4, %v960_v14  ;;  %v2202_v4 = vld [vmem:[%s3246_s13] ss:$0 sm:$0xff] }
 0x38f   : > { %v2583_v14 = vld [vmem:[%s3242_s9 + $0x20] sm:$0xff]  }
 0x390   : > { %v962_v17 = vmul.f32 1.442695, %v961_v15  ;;  %v2584_v15 = vld [vmem:[%s3242_s9 + $0x28] sm:$0xff]  }
 0x392   : > { %2611 = vpow2.f32 %v962_v17  ;;  %v2585_v17 = vld [vmem:[%s3242_s9 + $0x30] sm:$0xff]  }
 0x39c   : > { %v2612_v18 = vpop.eup %2611 }
 0x39d   : > { %v964_v19 = vsel %vm844_vm2, %v2612_v18, 0.0 }
 0x39e   : > { %965 = vadd.xlane.f32.xlu1 %v964_v19  ;;  %v2204_v19 = vld [vmem:[%s3241_s8] ss:$0 sm:$0xff] }
 0x3af   : > { %970 = vrot.lane.b32.xlu1 %v797_v51, %s2705_s23 }
 0x3b8   : > { %v853_v20 = vpop.xlane.xlu0 %852 }
 0x3b9   : > { %2613 = vrcp.f32 %v853_v20 }
 0x3bc   : > { %v859_v21 = vpop.permute.xlu0 %858 }
 0x3bd   : > { %v865_v22 = vsel %vm863_vm3, %v859_v21, 0 }
 0x3be   : > { %2388 = vmatpush3.bf16.msra.mxu1 %v865_v22 }
 0x3bf   : > { %2399 = vmatprep.subr.bf16.mxu1 %v2701_v16 }
 0x3c3   : > { %v2614_v23 = vpop.eup %2613 }
 0x3c4   : > { %v855_v24 = vmul.f32 %v2614_v23, %v2610_v12  ;;  %v2581_v12 = vld [vmem:[%s3242_s9 + $0x10] sm:$0xff]  }
 0x3c6   : > { %v856_v25 = vpack.c.bf16 %v855_v24, %v855_v24 }
 0x3c8   : > { %2390 = vmatmul.mubr.msk.bf16.vlgmr.msra.gmra.mrb[4].mxu1 %vm844_vm2, %v856_v25 }
 0x3c9   : > { %2401 = vmatprep.mubr.msk.bf16.mxu1 %vm2702_vm1, %v2701_v16 }
 0x42b   : > { %v966_v26 = vpop.xlane.xlu1 %965 }
 0x42c   : > { %2615 = vrcp.f32 %v966_v26 }
 0x42f   : > { %v971_v27 = vpop.permute.xlu1 %970 }
 0x430   : > { %v976_v28 = vsel %vm863_vm3, %v971_v27, 0  ;;  %v2208_v27 = vld [vmem:[%s3243_s10] ss:$0 sm:$0xff] }
 0x431   : > { %2400 = vmatpush3.bf16.msra.mxu1 %v976_v28 }
 0x432   : > { %2405 = vmatprep.subr.bf16.mxu1 %v2701_v16 }
 0x436   : > { %v2616_v29 = vpop.eup %2615 }
 0x437   : > { %v968_v30 = vmul.f32 %v2616_v29, %v2612_v18  ;;  %v2586_v18 = vld [vmem:[%s3242_s9 + $0x38] sm:$0xff]  }
 0x439   : > { %v969_v31 = vpack.c.bf16 %v968_v30, %v968_v30 }
 0x43b   : > { %2402 = vmatmul.mubr.msk.bf16.vlgmr.msra.gmra.mrb[8].mxu1 %vm844_vm2, %v969_v31 }
 0x43c   : > { %2413 = vmatprep.mubr.msk.bf16.mxu1 %vm2702_vm1, %v2701_v16  ;;  %2406 = vmatpush3.bf16.msra.mxu1 %v2573_v32 }
 0x43d   : > { %2407 = vmatprep.subr.bf16.mxu1 %v2701_v16 }
 0x440   : > { %2408 = vmatpush3.bf16.msra.mxu1 %v2574_v33 }
 0x441   : > { %2409 = vmatprep.subr.bf16.mxu1 %v2701_v16 }
 0x444   : > { %2410 = vmatpush3.bf16.msra.mxu1 %v2575_v34 }
 0x445   : > { %2411 = vmatprep.subr.bf16.mxu1 %v2701_v16 }
 0x448   : > { %2412 = vmatpush3.bf16.msra.mxu1 %v2576_v39 }
 0x449   : > { %2417 = vmatprep.subr.bf16.mxu1 %v2701_v16 }
 0x49b   : > { %v901_v35 = vpop.f32.mrb[4].mxu1 }
 0x49c   : > { %v2391_v36 = vpop.f32.mrb[5].mxu1 }
 0x49d   : > { %v904_v37 = vpop.f32.mrb[6].mxu1 }
 0x49e   : > { %v2392_v38 = vpop.f32.mrb[7].mxu1 }
 0x50e   : > { %v1012_v41 = vpop.f32.mrb[8].mxu1 }
 0x50f   : > { %1019 = vrot.lane.b32.xlu1 %v1012_v41, %s2705_s23  ;;  %v2403_v42 = vpop.f32.mrb[9].mxu1 }
 0x510   : > { %v1015_v43 = vpop.f32.mrb[10].mxu1 }
 0x511   : > { %v2404_v44 = vpop.f32.mrb[11].mxu1 }
 0x581   : > { %v1020_v45 = vpop.permute.xlu1 %1019 }
 0x582   : > { %v1022_v47 = vsel %vm626_vm0, %v901_v35, %v1020_v45 }
 0x583   : > { %v1023_v48 = vpack.c.bf16 %v1022_v47, %v1022_v47 }
 0x585   : > { %2414 = vmatmul.mubr.msk.bf16.vlgmr.msra.gmra.mrb[12].mxu1 %vm1056_vm4, %v1023_v48 }
 0x586   : > { %2421 = vmatprep.mubr.msk.bf16.mxu1 %vm2702_vm1, %v2701_v16  ;;  %2418 = vmatpush3.bf16.msra.mxu1 %v2577_v57  ;;  %v2587_v57 = vld [vmem:[%s3283_s4 + $0x10] sm:$0xff]  }
 0x587   : > { %2419 = vmatprep.subr.bf16.mxu1 %v2701_v16  ;;  %2446 = vmatpush3.bf16.msra.mxu0 %v2587_v57 }
 0x588   : > { %2447 = vmatprep.subr.bf16.mxu0 %v2701_v16 }
 0x58a   : > { %2420 = vmatpush3.bf16.msra.mxu1 %v2578_v58  ;;  %v2588_v58 = vld [vmem:[%s3283_s4 + $0x18] sm:$0xff]   ;;  %s3288_s4 = smov %s3287_s0 }
 0x58b   : > { %2425 = vmatprep.subr.bf16.mxu1 %v2701_v16  ;;  %2448 = vmatpush3.bf16.msra.mxu0 %v2588_v58 }
 0x58c   : > { %2453 = vmatprep.subr.bf16.mxu0 %v2701_v16 }
 0x658   : > { %v1094_v49 = vpop.f32.mrb[12].mxu1 }
 0x659   : > { %v1100_v50 = vadd.f32 %v1094_v49, %v2904_v46  ;;  %v2415_v51 = vpop.f32.mrb[13].mxu1  ;;  %v2217_v49 = vld [vmem:[%s3248_s15] ss:$0 sm:$0xff] }
 0x65a   : > { %v1097_v52 = vpop.f32.mrb[14].mxu1  ;;  %v2218_v51 = vld [vmem:[%s3249_s16] ss:$0 sm:$0xff] }
 0x65b   : > { %v2416_v53 = vpop.f32.mrb[15].mxu1  ;;  %v1103_v54 = vsel %vm626_vm0, %v1100_v50, 0.0  ;;  %v1107_v55 = vmul.f32 %v1100_v50, %v1100_v50 }
 0x65c   : > { %1104 = vadd.xlane.f32.xlu1 %v1103_v54 }
 0x65d   : > { %v1108_v56 = vsel %vm626_vm0, %v1107_v55, 0.0 }
 0x65e   : > { %1109 = vadd.xlane.f32.xlu0 %v1108_v56 }
 0x6e9   : > { %v1105_v46 = vpop.xlane.xlu1 %1104 }
 0x6ea   : > { %v1106_v59 = vmul.f32 0.03125, %v1105_v46 }
 0x6eb   : > { %v1110_v60 = vpop.xlane.xlu0 %1109 }
 0x6ec   : > { %v1112_v61 = vmul.f32 %v1106_v59, %v1106_v59  ;;  %v1111_v62 = vmul.f32 0.03125, %v1110_v60  ;;  %v1115_v2 = vsub.f32 %v1100_v50, %v1106_v59 }
 0x6ee   : > { %v1113_v63 = vsub.f32 %v1111_v62, %v1112_v61 }
 0x6f0   : > { %v1114_v0 = vmax.f32 %v1113_v63, 0.0 }
 0x6f2   : > { %v1116_v1 = vadd.f32 1e-05, %v1114_v0 }
 0x6f4   : > { %2617 = vrsqrt.f32 %v1116_v1 }
 0x6fe   : > { %v2618_v3 = vpop.eup %2617 }
 0x6ff   : > { %v1118_v5 = vmul.f32 %v2618_v3, %v1115_v2 }
 0x701   : > { %v1125_v7 = vmul.f32 %v2202_v4, %v1118_v5  ;;  %v2221_v5 = vld [vmem:[%s3244_s11 + $0x1] ss:$0 sm:$0xff] }
 0x703   : > { %v1132_v8 = vadd.f32 %v2203_v6, %v1125_v7  ;;  %v2222_v7 = vld [vmem:[%s3245_s12 + $0x1] ss:$0 sm:$0xff] }
 0x705   : > { %v1133_v10 = vpack.c.bf16 %v1132_v8, %v1132_v8 }
 0x707   : > { %2422 = vmatmul.mubr.msk.bf16.vlgmr.msra.gmra.mrb[16].mxu1 %vm626_vm0, %v1133_v10  ;;  %v1380_v10 = vmul.f32 %v2221_v5, %v2898_v40 }
 0x708   : > { %2426 = vmatpush3.bf16.msra.mxu1 %v2579_v9  ;;  %2441 = vmatprep.mubr.msk.bf16.mxu1 %vm2702_vm1, %v2701_v16  ;;  %v2589_v9 = vld [vmem:[%s3238_s5 + $0x10] sm:$0xff]  }
 0x709   : > { %2427 = vmatprep.subr.bf16.mxu1 %v2701_v16 }
 0x70c   : > { %2428 = vmatpush3.bf16.msra.mxu1 %v2580_v11 }
 0x70d   : > { %2429 = vmatprep.subr.bf16.mxu1 %v2701_v16 }
 0x710   : > { %2430 = vmatpush3.bf16.msra.mxu1 %v2581_v12  ;;  %v2590_v12 = vld [vmem:[%s3238_s5 + $0x18] sm:$0xff]  }
 0x711   : > { %2431 = vmatprep.subr.bf16.mxu1 %v2701_v16 }
 0x714   : > { %2432 = vmatpush3.bf16.msra.mxu1 %v2582_v13  ;;  %v1381_v13 = vadd.f32 %v2222_v7, %v1380_v10 }
 0x715   : > { %2433 = vmatprep.subr.bf16.mxu1 %v2701_v16 }
 0x718   : > { %2434 = vmatpush3.bf16.msra.mxu1 %v2583_v14  ;;  %v1383_v14 = vpack.c.bf16 %v1381_v13, %v1381_v13 }
 0x719   : > { %2435 = vmatprep.subr.bf16.mxu1 %v2701_v16 }
 0x71c   : > { %2436 = vmatpush3.bf16.msra.mxu1 %v2584_v15 }
 0x71d   : > { %2437 = vmatprep.subr.bf16.mxu1 %v2701_v16 }
 0x720   : > { %2438 = vmatpush3.bf16.msra.mxu1 %v2585_v17 }
 0x721   : > { %2439 = vmatprep.subr.bf16.mxu1 %v2701_v16 }
 0x724   : > { %2440 = vmatpush3.bf16.msra.mxu1 %v2586_v18 }
 0x725   : > { %2473 = vmatprep.subr.bf16.mxu1 %v2701_v16 }
 0x7da   : > { %v1194_v20 = vpop.f32.mrb[16].mxu1 }
 0x7db   : > { %v1195_v21 = vadd.f32 %v2204_v19, %v1194_v20  ;;  %v2423_v22 = vpop.f32.mrb[17].mxu1 }
 0x7dc   : > { %v1197_v23 = vpop.f32.mrb[18].mxu1 }
 0x7dd   : > { %v1200_v24 = vmax.f32 %v1195_v21, 0.0  ;;  %v2424_v25 = vpop.f32.mrb[19].mxu1 }
 0x7df   : > { %v1201_v26 = vpack.c.bf16 %v1200_v24, %v1200_v24 }
 0x7e1   : > { %2442 = vmatmul.mubr.bf16.vlgmr.msra.gmra.mrb[20].mxu1 %v1201_v26 }
 0x7e2   : > { %2475 = vmatprep.mubr.msk.bf16.mxu1 %vm2702_vm1, %v2701_v16 }
 0x8b4   : > { %v1307_v28 = vpop.f32.mrb[20].mxu1 }
 0x8b5   : > { %v1308_v29 = vadd.f32 %v2208_v27, %v1307_v28  ;;  %v2443_v30 = vpop.f32.mrb[21].mxu1 }
 0x8b6   : > { %v1310_v31 = vpop.f32.mrb[22].mxu1 }
 0x8b7   : > { %v1313_v32 = vadd.f32 %v1308_v29, %v1132_v8  ;;  %v2444_v33 = vpop.f32.mrb[23].mxu1 }
 0x8b9   : > { %v1316_v34 = vsel %vm626_vm0, %v1313_v32, 0.0  ;;  %v1320_v35 = vmul.f32 %v1313_v32, %v1313_v32 }
 0x8ba   : > { %1317 = vadd.xlane.f32.xlu0 %v1316_v34 }
 0x8bb   : > { %v1321_v36 = vsel %vm626_vm0, %v1320_v35, 0.0 }
 0x8be   : > { %1322 = vadd.xlane.f32.xlu0 %v1321_v36 }
 0x947   : > { %v1318_v37 = vpop.xlane.xlu0 %1317 }
 0x948   : > { %v1319_v38 = vmul.f32 0.03125, %v1318_v37 }
 0x94a   : > { %v1325_v41 = vmul.f32 %v1319_v38, %v1319_v38  ;;  %v1328_v47 = vsub.f32 %v1313_v32, %v1319_v38 }
 0x94b   : > { %v1323_v39 = vpop.xlane.xlu0 %1322 }
 0x94c   : > { %v1324_v42 = vmul.f32 0.03125, %v1323_v39 }
 0x94e   : > { %v1326_v43 = vsub.f32 %v1324_v42, %v1325_v41 }
 0x950   : > { %v1327_v44 = vmax.f32 %v1326_v43, 0.0 }
 0x952   : > { %v1329_v45 = vadd.f32 1e-05, %v1327_v44 }
 0x954   : > { %2619 = vrsqrt.f32 %v1329_v45 }
 0x95e   : > { %v2620_v48 = vpop.eup %2619 }
 0x95f   : > { %v1331_v50 = vmul.f32 %v2620_v48, %v1328_v47 }
 0x961   : > { %v1338_v52 = vmul.f32 %v2217_v49, %v1331_v50 }
 0x963   : > { %v1345_v53 = vadd.f32 %v2218_v51, %v1338_v52 }
 0x965   : > { %v1350_v54 = vsel %vm626_vm0, %v1345_v53, 0.0  ;;  %v1354_v55 = vmul.f32 %v1345_v53, %v1345_v53 }
 0x966   : > { %1351 = vadd.xlane.f32.xlu1 %v1350_v54 }
 0x967   : > { %v1355_v56 = vsel %vm626_vm0, %v1354_v55, 0.0 }
 0x968   : > { %1356 = vadd.xlane.f32.xlu0 %v1355_v56 }
 0x9f3   : > { %v1352_v46 = vpop.xlane.xlu1 %1351 }
 0x9f4   : > { %v1353_v59 = vmul.f32 0.03125, %v1352_v46 }
 0x9f5   : > { %v1357_v60 = vpop.xlane.xlu0 %1356 }
 0x9f6   : > { %v1359_v61 = vmul.f32 %v1353_v59, %v1353_v59  ;;  %v1358_v62 = vmul.f32 0.03125, %v1357_v60  ;;  %v1362_v2 = vsub.f32 %v1345_v53, %v1353_v59 }
 0x9f8   : > { %v1360_v63 = vsub.f32 %v1358_v62, %v1359_v61  ;;  %v2591_v62 = vld [vmem:[%s3239_s6 + $0x20] sm:$0xff]  }
 0x9fa   : > { %v1361_v0 = vmax.f32 %v1360_v63, 0.0  ;;  %v2592_v63 = vld [vmem:[%s3239_s6 + $0x28] sm:$0xff]  }
 0x9fc   : > { %v1363_v1 = vadd.f32 1e-05, %v1361_v0  ;;  %v2593_v0 = vld [vmem:[%s3239_s6 + $0x30] sm:$0xff]  }
 0x9fe   : > { %2621 = vrsqrt.f32 %v1363_v1 }
 0xa08   : > { %v2622_v3 = vpop.eup %2621 }
 0xa09   : > { %v1365_v4 = vmul.f32 %v2622_v3, %v1362_v2 }
 0xa0b   : > { %v1372_v6 = vmul.f32 %v2221_v5, %v1365_v4  ;;  %v2594_v5 = vld [vmem:[%s3239_s6 + $0x38] sm:$0xff]  }
 0xa0d   : > { %v3047_v8 = vadd.f32 %v2222_v7, %v1372_v6 }
 0xa0f   : > { %v1382_v11 = vpack.c.bf16 %v3047_v8, %v3047_v8 }
 0xa11   : > { %2450 = vmatmul.mubr.msk.bf16.vlgmr.msra.gmra.mrb[12].mxu0 %vm626_vm0, %v1382_v11 }
 0xa12   : > { %2454 = vmatpush3.bf16.msra.mxu0 %v2589_v9  ;;  %2457 = vmatprep.mubr.msk.bf16.mxu0 %vm2702_vm1, %v2701_v16 }
 0xa13   : > { %2455 = vmatprep.subr.bf16.mxu0 %v2701_v16 }
 0xa16   : > { %2456 = vmatpush3.bf16.msra.mxu0 %v2590_v12 }
 0xa17   : > { %2461 = vmatprep.subr.bf16.mxu0 %v2701_v16 }
 0xa19   : > { %2458 = vmatmul.mubr.msk.bf16.vlgmr.msra.gmra.mrb[16].mxu0 %vm626_vm0, %v1383_v14 }
 0xa1a   : > { %2463 = vmatprep.mubr.msk.bf16.mxu0 %vm2702_vm1, %v2701_v16 }
 0xae4   : > { %v1438_v40 = vpop.f32.mrb[12].mxu0 }
 0xae5   : > { %v1504_v15 = vpack.c.bf16 %v1438_v40, %v1438_v40  ;;  %v2451_v17 = vpop.f32.mrb[13].mxu0 }
 0xae6   : > { %v1441_v18 = vpop.f32.mrb[14].mxu0 }
 0xae7   : > { %1614 = vrot.lane.b32.xlu0 %v1504_v15, %s2703_s29  ;;  %v2452_v19 = vpop.f32.mrb[15].mxu0 }
 0xaec   : > { %v1498_v20 = vpop.f32.mrb[16].mxu0 }
 0xaed   : > { %v1505_v21 = vpack.c.bf16 %v1498_v20, %v1498_v20  ;;  %v2459_v22 = vpop.f32.mrb[17].mxu0 }
 0xaee   : > { %v1501_v23 = vpop.f32.mrb[18].mxu0  ;;  %v2595_v22 = vld [vmem:[%s3240_s7 + $0x10] sm:$0xff]  }
 0xaef   : > { %1616 = vrot.lane.b32.xlu1 %v1505_v21, %s2703_s29  ;;  %v2460_v24 = vpop.f32.mrb[19].mxu0  ;;  %v1510_v25 = vsel %vm626_vm0, %v1505_v21, 0  ;;  %v2596_v23 = vld [vmem:[%s3240_s7 + $0x18] sm:$0xff]   ;;  %s3286_s29 = sld [smem:[#allocation18_spill]] }
 0xaf0   : > { %2462 = vmatpush3.bf16.xpose.msra.mxu0 %v1510_v25 }
 0xaf1   : > { %2467 = vmatprep.subr.bf16.mxu0 %v2701_v16 }
 0xaf7   : > { %2464 = vmatmul.mubr.msk.bf16.vlgmr.msra.gmra.mrb[20].mxu0 %vm626_vm0, %v1504_v15 }
 0xaf8   : > { %2469 = vmatprep.mubr.msk.bf16.mxu0 %vm2702_vm1, %v2701_v16 }
 0xb59   : > { %v1615_v28 = vpop.permute.xlu0 %1614 }
 0xb61   : > { %v1617_v26 = vpop.permute.xlu1 %1616 }
 0xb62   : > { %v1622_v27 = vsel %vm626_vm0, %v1617_v26, 0 }
 0xb63   : > { %2474 = vmatpush3.bf16.xpose.msra.mxu1 %v1622_v27 }
 0xb64   : > { %2485 = vmatprep.subr.bf16.mxu1 %v2701_v16 }
 0xb6a   : > { %2476 = vmatmul.mubr.msk.bf16.vlgmr.msra.gmra.mrb[24].mxu1 %vm626_vm0, %v1615_v28 }
 0xb6b   : > { %2493 = vmatprep.mubr.msk.bf16.mxu1 %vm2702_vm1, %v2701_v16  ;;  %2486 = vmatpush3.bf16.msra.mxu1 %v2591_v62 }
 0xb6c   : > { %2487 = vmatprep.subr.bf16.mxu1 %v2701_v16 }
 0xb6f   : > { %2488 = vmatpush3.bf16.msra.mxu1 %v2592_v63 }
 0xb70   : > { %2489 = vmatprep.subr.bf16.mxu1 %v2701_v16 }
 0xb73   : > { %2490 = vmatpush3.bf16.msra.mxu1 %v2593_v0 }
 0xb74   : > { %2491 = vmatprep.subr.bf16.mxu1 %v2701_v16 }
 0xb77   : > { %2492 = vmatpush3.bf16.msra.mxu1 %v2594_v5 }
 0xbca   : > { %v1546_v29 = vpop.f32.mrb[20].mxu0 }
 0xbcb   : > { %v2465_v30 = vpop.f32.mrb[21].mxu0  ;;  %v1552_v31 = vsel %vm844_vm2, %v1546_v29, -inf }
 0xbcc   : > { %1553 = vmax.xlane.f32.xlu1 %v1552_v31  ;;  %v1549_v32 = vpop.f32.mrb[22].mxu0 }
 0xbcd   : > { %v2466_v33 = vpop.f32.mrb[23].mxu0 }
 0xbce   : > { %v2256_v33 = vld [vmem:[%s3246_s13 + $0x1] ss:$0 sm:$0xff] }
 0xc3d   : > { %v1658_v34 = vpop.f32.mrb[24].mxu1 }
 0xc3e   : > { %v2477_v35 = vpop.f32.mrb[25].mxu1  ;;  %v1664_v36 = vsel %vm844_vm2, %v1658_v34, -inf }
 0xc3f   : > { %1665 = vmax.xlane.f32.xlu0 %v1664_v36  ;;  %v1661_v37 = vpop.f32.mrb[26].mxu1  ;;  %v2257_v35 = vld [vmem:[%s3247_s14 + $0x1] ss:$0 sm:$0xff] }
 0xc40   : > { %v2478_v38 = vpop.f32.mrb[27].mxu1 }
 0xc41   : > { %v2597_v38 = vld [vmem:[%s3242_s9 + $0x40] sm:$0xff]  }
 0xc59   : > { %v1554_v39 = vpop.xlane.xlu1 %1553 }
 0xc5a   : > { %v1555_v41 = vsub.f32 %v1546_v29, %v1554_v39 }
 0xc5c   : > { %v1556_v42 = vmul.f32 1.442695, %v1555_v41  ;;  %v2598_v41 = vld [vmem:[%s3242_s9 + $0x48] sm:$0xff]  }
 0xc5e   : > { %2623 = vpow2.f32 %v1556_v42  ;;  %v2599_v42 = vld [vmem:[%s3242_s9 + $0x50] sm:$0xff]  }
 0xc68   : > { %v2624_v43 = vpop.eup %2623 }
 0xc69   : > { %v1558_v44 = vsel %vm844_vm2, %v2624_v43, 0.0 }
 0xc6a   : > { %1559 = vadd.xlane.f32.xlu1 %v1558_v44  ;;  %v2601_v44 = vld [vmem:[%s3242_s9 + $0x60] sm:$0xff]  }
 0xc7b   : > { %1565 = vrot.lane.b32.xlu1 %v1505_v21, %s2704_s22  ;;  %s2300_s22 = sshll.u32 %s2828_s1, 7  ;;  %s2706_s1 = smov [#allocation2]  }
 0xc7c   : > { %s3190_s20 = scalar_lea.hbm %s3287_s0, %s2300_s22 }
 0xccc   : > { %v1666_v45 = vpop.xlane.xlu0 %1665 }
 0xccd   : > { %v1667_v47 = vsub.f32 %v1658_v34, %v1666_v45  ;;  %v2602_v45 = vld [vmem:[%s3242_s9 + $0x68] sm:$0xff]  }
 0xccf   : > { %v1668_v48 = vmul.f32 1.442695, %v1667_v47  ;;  %v2603_v47 = vld [vmem:[%s3242_s9 + $0x70] sm:$0xff]  }
 0xcd1   : > { %2625 = vpow2.f32 %v1668_v48  ;;  %v2604_v48 = vld [vmem:[%s3242_s9 + $0x78] sm:$0xff]  }
 0xcdb   : > { %v2626_v49 = vpop.eup %2625 }
 0xcdc   : > { %v1670_v50 = vsel %vm844_vm2, %v2626_v49, 0.0 }
 0xcdd   : > { %1671 = vadd.xlane.f32.xlu0 %v1670_v50 }
 0xcf3   : > { %1676 = vrot.lane.b32.xlu0 %v1505_v21, %s2705_s23 }
 0xcf7   : > { %v1560_v51 = vpop.xlane.xlu1 %1559 }
 0xcf8   : > { %2627 = vrcp.f32 %v1560_v51 }
 0xcfb   : > { %v1566_v52 = vpop.permute.xlu1 %1565 }
 0xcfc   : > { %v1571_v53 = vsel %vm863_vm3, %v1566_v52, 0 }
 0xcfd   : > { %2468 = vmatpush3.bf16.msra.mxu0 %v1571_v53 }
 0xcfe   : > { %2479 = vmatprep.subr.bf16.mxu0 %v2701_v16 }
 0xd02   : > { %v2628_v54 = vpop.eup %2627 }
 0xd03   : > { %v1562_v55 = vmul.f32 %v2628_v54, %v2624_v43  ;;  %v2600_v43 = vld [vmem:[%s3242_s9 + $0x58] sm:$0xff]  }
 0xd05   : > { %v1563_v56 = vpack.c.bf16 %v1562_v55, %v1562_v55 }
 0xd07   : > { %2470 = vmatmul.mubr.msk.bf16.vlgmr.msra.gmra.mrb[24].mxu0 %vm844_vm2, %v1563_v56 }
 0xd08   : > { %2481 = vmatprep.mubr.msk.bf16.mxu0 %vm2702_vm1, %v2701_v16 }
 0xd6a   : > { %v1672_v57 = vpop.xlane.xlu0 %1671 }
 0xd6b   : > { %2629 = vrcp.f32 %v1672_v57 }
 0xd6e   : > { %v1677_v58 = vpop.permute.xlu0 %1676 }
 0xd6f   : > { %v1682_v46 = vsel %vm863_vm3, %v1677_v58, 0 }
 0xd70   : > { %2480 = vmatpush3.bf16.msra.mxu0 %v1682_v46 }
 0xd71   : > { %2497 = vmatprep.subr.bf16.mxu0 %v2701_v16 }
 0xd75   : > { %v2630_v59 = vpop.eup %2629 }
 0xd76   : > { %v1674_v60 = vmul.f32 %v2630_v59, %v2626_v49  ;;  %v2263_v49 = vld [vmem:[%s3241_s8 + $0x1] ss:$0 sm:$0xff] }
 0xd78   : > { %v1675_v61 = vpack.c.bf16 %v1674_v60, %v1674_v60 }
 0xd7a   : > { %2482 = vmatmul.mubr.msk.bf16.vlgmr.msra.gmra.mrb[28].mxu0 %vm844_vm2, %v1675_v61 }
 0xd7b   : > { %2501 = vmatprep.mubr.msk.bf16.mxu0 %vm2702_vm1, %v2701_v16  ;;  %2498 = vmatpush3.bf16.msra.mxu0 %v2595_v22 }
 0xd7c   : > { %2499 = vmatprep.subr.bf16.mxu0 %v2701_v16 }
 0xd7f   : > { %2500 = vmatpush3.bf16.msra.mxu0 %v2596_v23 }
 0xd80   : > { %2505 = vmatprep.subr.bf16.mxu0 %v2701_v16 }
 0xdda   : > { %v1607_v1 = vpop.f32.mrb[24].mxu0 }
 0xddb   : > { %v2471_v2 = vpop.f32.mrb[25].mxu0 }
 0xddc   : > { %v1610_v3 = vpop.f32.mrb[26].mxu0 }
 0xddd   : > { %v2472_v4 = vpop.f32.mrb[27].mxu0 }
 0xe4d   : > { %v1718_v6 = vpop.f32.mrb[28].mxu0 }
 0xe4e   : > { %1725 = vrot.lane.b32.xlu1 %v1718_v6, %s2705_s23  ;;  %v2483_v7 = vpop.f32.mrb[29].mxu0  ;;  %s604_s23 = sand.u32 1, %s2691_s30  }
 0xe4f   : > { %v1721_v9 = vpop.f32.mrb[30].mxu0  ;;  %s2182_s21 = sshll.u32 %s604_s23, 3  ;;  %s2094_s25 = scalar_lea.sflag [#allocation3], %s604_s23 }
 0xe50   : > { %v2484_v10 = vpop.f32.mrb[31].mxu0  ;;  %s606_s24 = scalar_lea.vmem [#allocation2], %s2182_s21  ;;  %s2641_s21 = sshll.u32 %s2706_s1, 4  ;;  %s2642_s21 = int_to_ptr.vmem [resolvable:$false] %s2641_s21 }
 0xe51   : > { %s2107_s17 = sshll.u32 %s606_s24, 4  ;;  %s3192_s17 = int_to_ptr.vmem [resolvable:$true] %s2107_s17 }
 0xe52   : > { %s2637_s3 = scalar_lea.vmem %s3192_s17, 128  ;;  %p2644_p0 = scmp.lt.s32.totalorder %s3192_s17, %s2642_s21 }
 0xe53   : > { %p2638_p11 = scmp.ne.s32.totalorder %s3192_s17, %s2637_s3 }
 0xe55   : > { %p2639_p12 = pnand %p2638_p11, %p2845_p5 }
 0xe57   : > { %p2640_p13 = pneg %p2639_p12 }
 0xec0   : > { %v1726_v11 = vpop.permute.xlu1 %1725 }
 0xec1   : > { %v1728_v12 = vsel %vm626_vm0, %v1607_v1, %v1726_v11 }
 0xec2   : > { %v1729_v13 = vpack.c.bf16 %v1728_v12, %v1728_v12  ;;  %v2295_v12 = vld [vmem:[%s3248_s15 + $0x1] ss:$0 sm:$0xff] }
 0xec4   : > { %2494 = vmatmul.mubr.msk.bf16.vlgmr.msra.gmra.mrb[28].mxu1 %vm1056_vm4, %v1729_v13 }
 0xf97   : > { %v1800_v14 = vpop.f32.mrb[28].mxu1 }
 0xf98   : > { %v1806_v40 = vadd.f32 %v1800_v14, %v3047_v8  ;;  %v2495_v15 = vpop.f32.mrb[29].mxu1  ;;  %v2296_v14 = vld [vmem:[%s3249_s16 + $0x1] ss:$0 sm:$0xff] }
 0xf99   : > { %v1803_v17 = vpop.f32.mrb[30].mxu1 }
 0xf9a   : > { %v2496_v18 = vpop.f32.mrb[31].mxu1  ;;  %v1811_v19 = vsel %vm626_vm0, %v1806_v40, 0.0  ;;  %v1815_v20 = vmul.f32 %v1806_v40, %v1806_v40 }
 0xf9b   : > { %1812 = vadd.xlane.f32.xlu1 %v1811_v19 }
 0xf9c   : > { %v1816_v21 = vsel %vm626_vm0, %v1815_v20, 0.0 }
 0xf9d   : > { %1817 = vadd.xlane.f32.xlu0 %v1816_v21 }
0x1028   : > { %v1813_v8 = vpop.xlane.xlu1 %1812 }
0x1029   : > { %v1814_v24 = vmul.f32 0.03125, %v1813_v8 }
0x102a   : > { %v1818_v25 = vpop.xlane.xlu0 %1817 }
0x102b   : > { %v1820_v26 = vmul.f32 %v1814_v24, %v1814_v24  ;;  %v1819_v27 = vmul.f32 0.03125, %v1818_v25  ;;  %v1823_v31 = vsub.f32 %v1806_v40, %v1814_v24 }
0x102d   : > { %v1821_v28 = vsub.f32 %v1819_v27, %v1820_v26 }
0x102f   : > { %v1822_v29 = vmax.f32 %v1821_v28, 0.0 }
0x1031   : > { %v1824_v30 = vadd.f32 1e-05, %v1822_v29  ;;  %v2297_v29 = vld [vmem:[%s3285_s26] ss:$0 sm:$0xff]  ;;  %s2643_s26 = scalar_lea.vmem %s2642_s21, 256 }
0x1032   : > { %p2645_p1 = scmp.lt.s32.totalorder %s2643_s26, %s2637_s3 }
0x1033   : > { %2631 = vrsqrt.f32 %v1824_v30 }
0x1034   : > { %p2646_p2 = por %p2645_p1, %p2644_p0 }
0x1036   : > { %p2647_p3 = pnand %p2646_p2, %p2640_p13 }
0x103d   : > { %v2632_v32 = vpop.eup %2631 }
0x103e   : > { %v1826_v34 = vmul.f32 %v2632_v32, %v1823_v31  ;;  %v2298_v31 = vld [vmem:[%s3286_s29] ss:$0 sm:$0xff] }
0x1040   : > { %v1833_v36 = vmul.f32 %v2256_v33, %v1826_v34 }
0x1042   : > { %v1840_v37 = vadd.f32 %v2257_v35, %v1833_v36 }
0x1044   : > { %v1841_v39 = vpack.c.bf16 %v1840_v37, %v1840_v37 }
0x1046   : > { %2502 = vmatmul.mubr.msk.bf16.vlgmr.msra.gmra.mrb[32].mxu0 %vm626_vm0, %v1841_v39 }
0x1047   : > { %2506 = vmatpush3.bf16.msra.mxu0 %v2597_v38  ;;  %2521 = vmatprep.mubr.msk.bf16.mxu0 %vm2702_vm1, %v2701_v16 }
0x1048   : > { %2507 = vmatprep.subr.bf16.mxu0 %v2701_v16 }
0x104b   : > { %2508 = vmatpush3.bf16.msra.mxu0 %v2598_v41 }
0x104c   : > { %2509 = vmatprep.subr.bf16.mxu0 %v2701_v16 }
0x104f   : > { %2510 = vmatpush3.bf16.msra.mxu0 %v2599_v42 }
0x1050   : > { %2511 = vmatprep.subr.bf16.mxu0 %v2701_v16 }
0x1053   : > { %2512 = vmatpush3.bf16.msra.mxu0 %v2600_v43 }
0x1054   : > { %2513 = vmatprep.subr.bf16.mxu0 %v2701_v16 }
0x1057   : > { %2514 = vmatpush3.bf16.msra.mxu0 %v2601_v44 }
0x1058   : > { %2515 = vmatprep.subr.bf16.mxu0 %v2701_v16 }
0x105b   : > { %2516 = vmatpush3.bf16.msra.mxu0 %v2602_v45 }
0x105c   : > { %2517 = vmatprep.subr.bf16.mxu0 %v2701_v16 }
0x105f   : > { %2518 = vmatpush3.bf16.msra.mxu0 %v2603_v47 }
0x1060   : > { %2519 = vmatprep.subr.bf16.mxu0 %v2701_v16  ;;  %v2284_v16 = vld [vmem:[%s3243_s10 + $0x1] ss:$0 sm:$0xff] }
0x1063   : > { %2520 = vmatpush3.bf16.msra.mxu0 %v2604_v48 }
0x1119   : > { %v1904_v50 = vpop.f32.mrb[32].mxu0 }
0x111a   : > { %v1905_v51 = vadd.f32 %v2263_v49, %v1904_v50  ;;  %v2503_v52 = vpop.f32.mrb[33].mxu0 }
0x111b   : > { %v1907_v53 = vpop.f32.mrb[34].mxu0 }
0x111c   : > { %v1910_v54 = vmax.f32 %v1905_v51, 0.0  ;;  %v2504_v55 = vpop.f32.mrb[35].mxu0 }
0x111e   : > { %v1911_v56 = vpack.c.bf16 %v1910_v54, %v1910_v54 }
0x1120   : > { %2522 = vmatmul.mubr.bf16.vlgmr.msra.gmra.mrb[36].mxu0 %v1911_v56 }
0x11f3   : > { %v2019_v57 = vpop.f32.mrb[36].mxu0 }
0x11f4   : > { %v2020_v58 = vadd.f32 %v2284_v16, %v2019_v57  ;;  %v2523_v46 = vpop.f32.mrb[37].mxu0 }
0x11f5   : > { %v2022_v59 = vpop.f32.mrb[38].mxu0 }
0x11f6   : > { %v2025_v60 = vadd.f32 %v2020_v58, %v1840_v37  ;;  %v2524_v61 = vpop.f32.mrb[39].mxu0 }
0x11f8   : > { %v2030_v62 = vsel %vm626_vm0, %v2025_v60, 0.0  ;;  %v2034_v63 = vmul.f32 %v2025_v60, %v2025_v60 }
0x11f9   : > { %2031 = vadd.xlane.f32.xlu0 %v2030_v62 }
0x11fa   : > { %v2035_v0 = vsel %vm626_vm0, %v2034_v63, 0.0 }
0x11fb   : > { %2036 = vadd.xlane.f32.xlu1 %v2035_v0 }
0x1286   : > { %v2032_v1 = vpop.xlane.xlu0 %2031 }
0x1287   : > { %v2033_v2 = vmul.f32 0.03125, %v2032_v1 }
0x1288   : > { %v2037_v3 = vpop.xlane.xlu1 %2036 }
0x1289   : > { %v2039_v4 = vmul.f32 %v2033_v2, %v2033_v2  ;;  %v2038_v5 = vmul.f32 0.03125, %v2037_v3  ;;  %v2042_v10 = vsub.f32 %v2025_v60, %v2033_v2 }
0x128b   : > { %v2040_v6 = vsub.f32 %v2038_v5, %v2039_v4 }
0x128d   : > { %v2041_v7 = vmax.f32 %v2040_v6, 0.0 }
0x128f   : > { %v2043_v9 = vadd.f32 1e-05, %v2041_v7 }
0x1291   : > { %2633 = vrsqrt.f32 %v2043_v9 }
0x129b   : > { %v2634_v11 = vpop.eup %2633 }
0x129c   : > { %v2045_v13 = vmul.f32 %v2634_v11, %v2042_v10 }
0x129e   : > { %v2052_v40 = vmul.f32 %v2295_v12, %v2045_v13 }
0x12a0   : > { %v2059_v15 = vadd.f32 %v2296_v14, %v2052_v40 }
0x12a2   : > { %v2062_v17 = vsel %vm626_vm0, %v2059_v15, 0.0  ;;  %v2066_v18 = vmul.f32 %v2059_v15, %v2059_v15 }
0x12a3   : > { %2063 = vadd.xlane.f32.xlu0 %v2062_v17 }
0x12a4   : > { %v2067_v19 = vsel %vm626_vm0, %v2066_v18, 0.0 }
0x12a5   : > { %2068 = vadd.xlane.f32.xlu1 %v2067_v19 }
0x1330   : > { %v2064_v20 = vpop.xlane.xlu0 %2063 }
0x1331   : > { %v2065_v21 = vmul.f32 0.03125, %v2064_v20 }
0x1332   : > { %v2069_v22 = vpop.xlane.xlu1 %2068 }
0x1333   : > { %v2071_v23 = vmul.f32 %v2065_v21, %v2065_v21  ;;  %v2070_v8 = vmul.f32 0.03125, %v2069_v22  ;;  %v2074_v27 = vsub.f32 %v2059_v15, %v2065_v21 }
0x1335   : > { %v2072_v24 = vsub.f32 %v2070_v8, %v2071_v23 }
0x1337   : > { %v2073_v25 = vmax.f32 %v2072_v24, 0.0 }
0x1339   : > { %v2075_v26 = vadd.f32 1e-05, %v2073_v25 }
0x133b   : > { %2635 = vrsqrt.f32 %v2075_v26 }
0x1345   : > { %v2636_v28 = vpop.eup %2635 }
0x1346   : > { %v2077_v30 = vmul.f32 %v2636_v28, %v2074_v27 }
0x1348   : > { %v2084_v32 = vmul.f32 %v2297_v29, %v2077_v30 }
0x134a   : > { %v2091_v33 = vadd.f32 %v2298_v31, %v2084_v32 }
0x134c   : > { %2092 = vst.msk [vmem:[%s606_s24] sm:$0xff] %vm626_vm0, %v2091_v33 }
0x134d   : > { %2650 = shalt.err (!%p2647_p3)
}
0x134e   : > { %s2651_s23 = scalar_lea.hbm %s3190_s20, 128  ;;  %s2655_s29 = scalar_lea.hbm %s3288_s4, 256 }
0x134f   : > { %p2652_p4 = scmp.ne.s32.totalorder %s3190_s20, %s2651_s23  ;;  %p2656_p9 = scmp.lt.u32.totalorder %s3190_s20, %s3288_s4 }
0x1350   : > { %p2657_p10 = scmp.lt.u32.totalorder %s2655_s29, %s2651_s23  ;;  %p2659_p12 = scmp.lt.u32.totalorder %s2651_s23, %s3190_s20 }
0x1351   : > { %p2653_p7 = pnand %p2652_p4, %p2845_p5 }
0x1352   : > { %p2658_p11 = por %p2657_p10, %p2656_p9 }
0x1353   : > { %p2654_p8 = pneg %p2653_p7 }
0x1354   : > { %p2660_p13 = por %p2659_p12, %p2658_p11 }
0x1356   : > { %p2661_p0 = pnand %p2660_p13, %p2654_p8 }
0x1358   : > { %2664 = shalt.err (!%p2661_p0)
}
0x1359   : > { %2525 = dma.vmem_to_hbm [thread:$0]  (%p2845_p5), %s3192_s17, 128, %s3190_s20, %s2094_s25  }
0x135a PF: > { %s3289_s18 = sld [smem:[#allocation7_spill]]  ;;  %s3290_s19 = sld [smem:[#allocation5_spill]] }
0x1360   : > { %p2531_p1 = scmp.ge.s32.totalorder %s3289_s18, 2  ;;  %s2119_s3 = sand.u32 1, %s3290_s19  }
0x1361   : > { %s2120_s1 = scalar_lea.sflag [#allocation3], %s2119_s3 }
0x1362   : > { %p2528_p2 = pnand %p2531_p1, %p2849_p6 }
0x1364   : > { %2682 = dma.done.wait (!%p2528_p2), %s2120_s1, 128  }
0x1365   : > { %2684 = vsyncadd (!%p2528_p2), %s2120_s1, 4294967168  ;;  %s3292_s21 = sld [smem:[#allocation8_spill]]  ;;  %s3293_s26 = sld [smem:[#allocation6_spill]] }
0x1366   : > { %s3294_s20 = sld [smem:[#allocation9_spill]]  ;;  %s3295_s0 = smov %s2691_s30 }
0x136b   : > { %p29_p3 = scmp.ge.s32.totalorder %s3292_s21, 4   ;;  %s3296_s30 = smov %s3293_s26 }
0x136d   :  { %31 = sbr.rel (!%p29_p3) target bundleno = 12 (0xc), region = 147 }
0x1374   :  { %2125 = vsyncpa [#allocation3], 1 }
0x1375   :  { %2127 = vsyncpa [#allocation3 + $0x1], 1 }

</bundles_post_ra>
